<compile_context>
chip_gen: v7x
topology: tpu7x:2x2x1
jax: 0.10.0
libtpu: 0.0.40
codegen_flags: <defaults>
</compile_context>

<pallas_src>
import jax
import jax.numpy as jnp
from jax.experimental import pallas as pl
from jax.experimental.pallas import tpu as pltpu

# ---------------- config (small, consistent with the module) ----------------
VOCAB = 100
VOCAB_PAD = 128          # one-hot lane width (>= VOCAB, multiple of 128)
MAX_POS = 16
B, S = 2, 8              # batch, sequence length
D = 32                   # bert_model.config.hidden_size
N_HEADS = 2
HEAD_DIM = D // N_HEADS
FFN = 64
N_BERT_LAYERS = 1
LSTM_HIDDEN = 16         # hidden_size of the BiLSTM
LSTM_LAYERS = 2          # num_layers of the BiLSTM
ATTN_SCALE = 1.0 / (HEAD_DIM ** 0.5)
LANE = 128               # lane width of both parameter slabs


# ---------- static slab layouts (shared by the packer and the kernel) --------
def _weight_layout():
    rows, r = {}, 0

    def add(name, n):
        nonlocal r
        rows[name] = r
        r += n

    add("word_emb", VOCAB_PAD)                       # rows are 32-aligned below
    for l in range(N_BERT_LAYERS):
        add(f"wqkv{l}", D)
        add(f"wo{l}", D)
        add(f"wffn1{l}", D)
        add(f"wffn2{l}", FFN)
    add("lstm0", D)
    add("lstm1", 2 * LSTM_HIDDEN)
    add("fc", 2 * LSTM_HIDDEN)
    return rows, r


W_ROW, W_NROWS = _weight_layout()                    # 384 rows for this config


def _vector_layout():
    rows, r = {}, 0

    def add(name):
        nonlocal r
        rows[name] = r
        r += 1

    add("emb_ln_g"); add("emb_ln_b")
    for l in range(N_BERT_LAYERS):
        for nm in ("bqkv", "bo", "ln1_g", "ln1_b",
                   "bffn1", "bffn2", "ln2_g", "ln2_b"):
            add(f"{nm}{l}")
    add("lstm0_b"); add("lstm1_b"); add("fc_b")
    r = -(-r // 8) * 8                               # align the pos block
    pos_row = r
    r += B * S
    return rows, pos_row, r


V_ROW, V_POS_ROW, V_NROWS = _vector_layout()         # 32 rows for this config


# ----------------------------- fused Pallas kernel ---------------------------
def _fused_forward_kernel(ids_ref, mask_ref, vecs_ref, wmat_ref, out_ref):
    f32, bf16 = jnp.float32, jnp.bfloat16

    def vec(name, n):                                # [1, n] f32 bias / LN vector
        r = V_ROW[name]
        return vecs_ref[r:r + 1, 0:n]

    def wmat(name, nrows, ncols):                    # [nrows, ncols] bf16 weight
        r = W_ROW[name]
        return wmat_ref[r:r + nrows, 0:ncols]

    def mm(a, w_bf16):                               # bf16 MXU inputs, f32 accum
        return jnp.dot(a.astype(bf16), w_bf16, preferred_element_type=f32)

    def layer_norm(x, g, b):
        # single-pass statistics: var = E[x^2] - mu^2
        mu = jnp.mean(x, axis=-1, keepdims=True)
        ms = jnp.mean(x * x, axis=-1, keepdims=True)
        var = jnp.maximum(ms - mu * mu, 0.0)
        return (x - mu) * jax.lax.rsqrt(var + 1e-12) * g + b

    # ---- embedding: one-hot MXU gather + positional add + LayerNorm ----
    vocab_iota = jax.lax.broadcasted_iota(jnp.int32, (B * S, VOCAB_PAD), 1)
    onehot = jnp.where(ids_ref[...] == vocab_iota, 1.0, 0.0).astype(bf16)
    x = (jnp.dot(onehot, wmat("word_emb", VOCAB_PAD, D),
                 preferred_element_type=f32)
         + vecs_ref[V_POS_ROW:V_POS_ROW + B * S, 0:D])            # [B*S, D]
    x = layer_norm(x, vec("emb_ln_g", D), vec("emb_ln_b", D))

    # Additive attention mask, one [B*nH*S, S] slab shared by all layers.
    mask_add = (1.0 - mask_ref[...]) * -1e9                        # [B, S]
    mask_all = jnp.concatenate(
        [jnp.broadcast_to(mask_add[b:b + 1, :], (S, S))
         for b in range(B) for _ in range(N_HEADS)], axis=0)       # [B*nH*S, S]

    for l in range(N_BERT_LAYERS):
        # ---- self-attention (heads are static lane slices of the qkv slab) ----
        qkv = mm(x, wmat(f"wqkv{l}", D, 3 * D)) + vec(f"bqkv{l}", 3 * D)
        s_tiles, v_tiles = [], []
        for b in range(B):
            r0 = b * S
            for h in range(N_HEADS):
                c0 = h * HEAD_DIM
                q = (qkv[r0:r0 + S, c0:c0 + HEAD_DIM] * ATTN_SCALE).astype(bf16)
                k = qkv[r0:r0 + S, D + c0:D + c0 + HEAD_DIM].astype(bf16)
                v_tiles.append(
                    qkv[r0:r0 + S, 2 * D + c0:2 * D + c0 + HEAD_DIM].astype(bf16))
                s_tiles.append(jax.lax.dot_general(
                    q, k, (((1,), (1,)), ((), ())),
                    preferred_element_type=f32))                  # [S, S]

        # ONE softmax pass over all (batch, head) score tiles.
        s_all = jnp.concatenate(s_tiles, axis=0) + mask_all        # [B*nH*S, S]
        s_all = s_all - jnp.max(s_all, axis=-1, keepdims=True)
        p_all = jnp.exp(s_all)
        p_all = (p_all * pl.reciprocal(jnp.sum(p_all, axis=-1, keepdims=True),
                                       approx=True)).astype(bf16)

        # Per-tile p@v; heads assembled by lane concat (no VMEM scratch round trip).
        heads = [jnp.dot(p_all[t * S:(t + 1) * S, :], v_tiles[t],
                         preferred_element_type=f32)
                 for t in range(B * N_HEADS)]
        ctx = jnp.concatenate(
            [jnp.concatenate(heads[b * N_HEADS:(b + 1) * N_HEADS], axis=1)
             for b in range(B)], axis=0)                           # [B*S, D]

        attn_out = mm(ctx, wmat(f"wo{l}", D, D)) + vec(f"bo{l}", D)
        x = layer_norm(x + attn_out, vec(f"ln1_g{l}", D), vec(f"ln1_b{l}", D))

        # ---- feed-forward ----
        hmid = mm(x, wmat(f"wffn1{l}", D, FFN)) + vec(f"bffn1{l}", FFN)
        # TODO(synk): HF/PyTorch BERT uses exact (erf) GELU; tanh approximation is
        # kept for guaranteed Mosaic lowering (diff ~1e-3).
        hmid = jax.nn.gelu(hmid)
        ffn_out = mm(hmid, wmat(f"wffn2{l}", FFN, D)) + vec(f"bffn2{l}", D)
        x = layer_norm(x + ffn_out, vec(f"ln2_g{l}", D), vec(f"ln2_b{l}", D))

    # ---- CLS rows (token 0 of every sequence) via static sublane slices ----
    cls = jnp.concatenate([x[b * S:b * S + 1, :] for b in range(B)], axis=0)

    # ---- Bi-LSTM over the length-1 sequence cls.unsqueeze(1), h0 = c0 = 0 ----
    # Each direction collapses to one cell: w_hh @ h0 == 0 and f * c0 == 0, so the
    # recurrent weights / f gate are dropped. Both directions and all three live
    # gates share one [B, in] @ [in, 6H] matmul; per-gate columns are packed
    # [fwd | bwd], so outputs land in torch's [h_fwd | h_bwd] order.
    H2 = 2 * LSTM_HIDDEN
    h = cls
    for name, in_size in (("lstm0", D), ("lstm1", H2)):
        g = mm(h, wmat(name, in_size, 3 * H2)) + vec(name + "_b", 3 * H2)
        i_g = jax.nn.sigmoid(g[:, 0:H2])
        g_g = jnp.tanh(g[:, H2:2 * H2])
        o_g = jax.nn.sigmoid(g[:, 2 * H2:3 * H2])
        h = o_g * jnp.tanh(i_g * g_g)                              # [B, 2H]
        # nn.Dropout between/after LSTM layers is identity (eval mode).

    out_ref[...] = mm(h, wmat("fc", H2, 1)) + vec("fc_b", 1)       # [B, 1]


# ------------------------------- forward --------------------------------------
def forward(packed, input_ids, attention_mask):
    ids = input_ids.reshape(B * S, 1).astype(jnp.int32)
    mask_f32 = attention_mask.astype(jnp.float32)
    return pl.pallas_call(
        _fused_forward_kernel,
        out_shape=jax.ShapeDtypeStruct((B, 1), jnp.float32),
        compiler_params=pltpu.CompilerParams(vmem_limit_bytes=16 * 1024 * 1024),
    )(ids, mask_f32, packed["vecs"], packed["wmat"])


# ----------------------------- parameters ------------------------------------
def init_params(key):
    """Parameters in PyTorch-like layouts (nn.LSTM gate order i,f,g,o, etc.)."""
    ks = iter(jax.random.split(key, 32))

    def nrm(shape):
        return 0.02 * jax.random.normal(next(ks), shape, jnp.float32)

    params = {
        "word_emb": nrm((VOCAB, D)),
        "pos_emb": nrm((MAX_POS, D)),
        "emb_ln_g": jnp.ones((D,), jnp.float32),
        "emb_ln_b": jnp.zeros((D,), jnp.float32),
    }
    layers = []
    for _ in range(N_BERT_LAYERS):
        layers.append(dict(
            w_qkv=nrm((D, 3 * D)), b_qkv=jnp.zeros((3 * D,), jnp.float32),
            w_o=nrm((D, D)), b_o=jnp.zeros((D,), jnp.float32),
            ln1_g=jnp.ones((D,), jnp.float32), ln1_b=jnp.zeros((D,), jnp.float32),
            w_ffn1=nrm((D, FFN)), b_ffn1=jnp.zeros((FFN,), jnp.float32),
            w_ffn2=nrm((FFN, D)), b_ffn2=jnp.zeros((D,), jnp.float32),
            ln2_g=jnp.ones((D,), jnp.float32), ln2_b=jnp.zeros((D,), jnp.float32),
        ))
    params["bert_layers"] = layers

    lstm = []
    in_size = D
    for _ in range(LSTM_LAYERS):
        layer = {}
        for direction in ("fwd", "bwd"):
            layer[direction] = dict(
                w_ih=nrm((4 * LSTM_HIDDEN, in_size)),   # torch gate order i,f,g,o
                b_ih=nrm((4 * LSTM_HIDDEN,)),
                b_hh=nrm((4 * LSTM_HIDDEN,)),
                # w_hh exists in nn.LSTM but multiplies h0 == 0 here.
            )
        lstm.append(layer)
        in_size = 2 * LSTM_HIDDEN
    params["lstm"] = lstm

    params["fc_w"] = nrm((1, 2 * LSTM_HIDDEN))          # PyTorch Linear [out, in]
    params["fc_b"] = jnp.zeros((1,), jnp.float32)
    return params


def pack_params(p):
    """One-time re-pack of PyTorch-layout params into two VMEM slabs:
       wmat [W_NROWS, 128] bf16 -- every matmul weight matrix (MXU rhs)
       vecs [V_NROWS, 128] f32  -- every bias / LayerNorm vector + tiled pos_emb
    Done outside the jitted forward, so no per-call reshape/transpose ops and
    only 4 entry DMAs into the kernel."""
    wmat = jnp.zeros((W_NROWS, LANE), jnp.bfloat16)
    vecs = jnp.zeros((V_NROWS, LANE), jnp.float32)

    def put_w(slab, name, mat):
        r = W_ROW[name]
        return slab.at[r:r + mat.shape[0], 0:mat.shape[1]].set(
            mat.astype(jnp.bfloat16))

    def put_v(slab, name, v):
        return slab.at[V_ROW[name], 0:v.shape[0]].set(v.astype(jnp.float32))

    wmat = put_w(wmat, "word_emb", p["word_emb"])        # [VOCAB, D] (rest zero)
    vecs = put_v(vecs, "emb_ln_g", p["emb_ln_g"])
    vecs = put_v(vecs, "emb_ln_b", p["emb_ln_b"])
    for l, lay in enumerate(p["bert_layers"]):
        wmat = put_w(wmat, f"wqkv{l}", lay["w_qkv"])
        wmat = put_w(wmat, f"wo{l}", lay["w_o"])
        wmat = put_w(wmat, f"wffn1{l}", lay["w_ffn1"])
        wmat = put_w(wmat, f"wffn2{l}", lay["w_ffn2"])
        vecs = put_v(vecs, f"bqkv{l}", lay["b_qkv"])
        vecs = put_v(vecs, f"bo{l}", lay["b_o"])
        vecs = put_v(vecs, f"ln1_g{l}", lay["ln1_g"])
        vecs = put_v(vecs, f"ln1_b{l}", lay["ln1_b"])
        vecs = put_v(vecs, f"bffn1{l}", lay["b_ffn1"])
        vecs = put_v(vecs, f"bffn2{l}", lay["b_ffn2"])
        vecs = put_v(vecs, f"ln2_g{l}", lay["ln2_g"])
        vecs = put_v(vecs, f"ln2_b{l}", lay["ln2_b"])

    def pack_bilstm(layer):
        # Keep only the live gates (i, g, o); f gates a zero cell state.
        # Column order: [i_fwd | i_bwd | g_fwd | g_bwd | o_fwd | o_bwd].
        H = LSTM_HIDDEN
        cols, bcols = [], []
        for gate in (0, 2, 3):                           # torch order: i, f, g, o
            for direction in ("fwd", "bwd"):
                w_ih = layer[direction]["w_ih"]          # [4H, in]
                bias = layer[direction]["b_ih"] + layer[direction]["b_hh"]
                cols.append(w_ih[gate * H:(gate + 1) * H, :].T)    # [in, H]
                bcols.append(bias[gate * H:(gate + 1) * H])
        return jnp.concatenate(cols, axis=1), jnp.concatenate(bcols)

    for idx in range(LSTM_LAYERS):
        w, b = pack_bilstm(p["lstm"][idx])
        wmat = put_w(wmat, f"lstm{idx}", w)
        vecs = put_v(vecs, f"lstm{idx}_b", b)

    wmat = put_w(wmat, "fc", p["fc_w"].T)                # [2H, 1]
    vecs = put_v(vecs, "fc_b", p["fc_b"])

    # Tiled positional embeddings for the flat [B*S, D] activation slab.
    pos_tiled = jnp.tile(p["pos_emb"][:S], (B, 1))       # [B*S, D]
    vecs = vecs.at[V_POS_ROW:V_POS_ROW + B * S, 0:D].set(pos_tiled)
    return {"wmat": wmat, "vecs": vecs}


# -------------------------------- main ----------------------------------------
if __name__ == "__main__":
    key = jax.random.PRNGKey(0)
    pk, ik = jax.random.split(key)
    params = init_params(pk)
    packed = pack_params(params)

    input_ids = jax.random.randint(ik, (B, S), 0, VOCAB, dtype=jnp.int32)
    attention_mask = jnp.ones((B, S), dtype=jnp.int32).at[:, S - 2:].set(0)

    logits = jax.jit(forward)(packed, input_ids, attention_mask)
    jax.block_until_ready(logits)
    assert logits.shape == (B, 1) and logits.dtype == jnp.float32
    print("KERNEL_OK")
</pallas_src>

<mosaic_0001>
module attributes {stable_mosaic.version = 11 : i64} {
  func.func @_fused_forward_kernel(%arg0: memref<16x1xi32, #tpu.memory_space<vmem>>, %arg1: memref<2x8xf32, #tpu.memory_space<vmem>>, %arg2: memref<32x128xf32, #tpu.memory_space<vmem>>, %arg3: memref<384x128xbf16, #tpu.memory_space<vmem>>, %arg4: memref<2x1xf32, #tpu.memory_space<vmem>>) attributes {dimension_semantics = [], scalar_prefetch = 0 : i64, scratch_operands = 0 : i64, tpu.core_type = #tpu.core_type<tc>} {
    %0 = tpu.iota {dimensions = array<i32: 1>} : vector<16x128xi32>
    %c0 = arith.constant 0 : index
    %c0_0 = arith.constant 0 : index
    %1 = vector.load %arg0[%c0, %c0_0] : memref<16x1xi32, #tpu.memory_space<vmem>>, vector<16x1xi32>
    %2 = vector.broadcast %1 : vector<16x1xi32> to vector<16x128xi32>
    %3 = arith.cmpi eq, %2, %0 : vector<16x128xi32>
    %cst = arith.constant 1.000000e+00 : f32
    %cst_1 = arith.constant 0.000000e+00 : f32
    %4 = vector.broadcast %cst : f32 to vector<16x128xf32>
    %5 = vector.broadcast %cst_1 : f32 to vector<16x128xf32>
    %6 = arith.select %3, %4, %5 : vector<16x128xi1>, vector<16x128xf32>
    %7 = arith.truncf %6 : vector<16x128xf32> to vector<16x128xbf16>
    %c0_2 = arith.constant 0 : index
    %c0_3 = arith.constant 0 : index
    %8 = vector.load %arg3[%c0_2, %c0_3] : memref<384x128xbf16, #tpu.memory_space<vmem>>, vector<128x32xbf16>
    %cst_4 = arith.constant dense<0.000000e+00> : vector<16x32xf32>
    %9 = tpu.matmul %7, %8, %cst_4 {dimension_numbers = #tpu.dot_dimension_numbers<[1], [0], [0], [1], [0, 0, 1, 1], [], []>} : vector<16x128xbf16>, vector<128x32xbf16>, vector<16x32xf32> -> vector<16x32xf32>
    %c16 = arith.constant 16 : index
    %c0_5 = arith.constant 0 : index
    %10 = vector.load %arg2[%c16, %c0_5] : memref<32x128xf32, #tpu.memory_space<vmem>>, vector<16x32xf32>
    %11 = arith.addf %9, %10 : vector<16x32xf32>
    %c0_6 = arith.constant 0 : index
    %c0_7 = arith.constant 0 : index
    %12 = vector.load %arg2[%c0_6, %c0_7] : memref<32x128xf32, #tpu.memory_space<vmem>>, vector<1x32xf32>
    %c1 = arith.constant 1 : index
    %c0_8 = arith.constant 0 : index
    %13 = vector.load %arg2[%c1, %c0_8] : memref<32x128xf32, #tpu.memory_space<vmem>>, vector<1x32xf32>
    %cst_9 = arith.constant dense<0.000000e+00> : vector<16xf32>
    %14 = vector.multi_reduction <add>, %11, %cst_9 [1] : vector<16x32xf32> to vector<16xf32>
    %15 = vector.shape_cast %14 : vector<16xf32> to vector<16x1xf32>
    %cst_10 = arith.constant 3.200000e+01 : f32
    %16 = vector.broadcast %cst_10 : f32 to vector<16x1xf32>
    %17 = arith.divf %15, %16 : vector<16x1xf32>
    %18 = arith.mulf %11, %11 : vector<16x32xf32>
    %cst_11 = arith.constant dense<0.000000e+00> : vector<16xf32>
    %19 = vector.multi_reduction <add>, %18, %cst_11 [1] : vector<16x32xf32> to vector<16xf32>
    %20 = vector.shape_cast %19 : vector<16xf32> to vector<16x1xf32>
    %cst_12 = arith.constant 3.200000e+01 : f32
    %21 = vector.broadcast %cst_12 : f32 to vector<16x1xf32>
    %22 = arith.divf %20, %21 : vector<16x1xf32>
    %23 = arith.mulf %17, %17 : vector<16x1xf32>
    %24 = arith.subf %22, %23 : vector<16x1xf32>
    %cst_13 = arith.constant 0.000000e+00 : f32
    %25 = vector.broadcast %cst_13 : f32 to vector<16x1xf32>
    %26 = arith.maximumf %24, %25 : vector<16x1xf32>
    %27 = vector.broadcast %17 : vector<16x1xf32> to vector<16x32xf32>
    %28 = arith.subf %11, %27 : vector<16x32xf32>
    %cst_14 = arith.constant 9.99999996E-13 : f32
    %29 = vector.broadcast %cst_14 : f32 to vector<16x1xf32>
    %30 = arith.addf %26, %29 : vector<16x1xf32>
    %31 = math.rsqrt %30 : vector<16x1xf32>
    %32 = vector.broadcast %31 : vector<16x1xf32> to vector<16x32xf32>
    %33 = arith.mulf %28, %32 : vector<16x32xf32>
    %34 = vector.broadcast %12 : vector<1x32xf32> to vector<16x32xf32>
    %35 = arith.mulf %33, %34 : vector<16x32xf32>
    %36 = vector.broadcast %13 : vector<1x32xf32> to vector<16x32xf32>
    %37 = arith.addf %35, %36 : vector<16x32xf32>
    %c0_15 = arith.constant 0 : index
    %c0_16 = arith.constant 0 : index
    %38 = vector.load %arg1[%c0_15, %c0_16] : memref<2x8xf32, #tpu.memory_space<vmem>>, vector<2x8xf32>
    %cst_17 = arith.constant 1.000000e+00 : f32
    %39 = vector.broadcast %cst_17 : f32 to vector<2x8xf32>
    %40 = arith.subf %39, %38 : vector<2x8xf32>
    %cst_18 = arith.constant -1.000000e+09 : f32
    %41 = vector.broadcast %cst_18 : f32 to vector<2x8xf32>
    %42 = arith.mulf %40, %41 : vector<2x8xf32>
    %43 = vector.extract_strided_slice %42 {offsets = [0, 0], sizes = [1, 8], strides = [1, 1]} : vector<2x8xf32> to vector<1x8xf32>
    %44 = vector.shape_cast %43 : vector<1x8xf32> to vector<1x8xf32>
    %45 = vector.broadcast %44 : vector<1x8xf32> to vector<8x8xf32>
    %46 = vector.extract_strided_slice %42 {offsets = [0, 0], sizes = [1, 8], strides = [1, 1]} : vector<2x8xf32> to vector<1x8xf32>
    %47 = vector.shape_cast %46 : vector<1x8xf32> to vector<1x8xf32>
    %48 = vector.broadcast %47 : vector<1x8xf32> to vector<8x8xf32>
    %49 = vector.extract_strided_slice %42 {offsets = [1, 0], sizes = [1, 8], strides = [1, 1]} : vector<2x8xf32> to vector<1x8xf32>
    %50 = vector.shape_cast %49 : vector<1x8xf32> to vector<1x8xf32>
    %51 = vector.broadcast %50 : vector<1x8xf32> to vector<8x8xf32>
    %52 = vector.extract_strided_slice %42 {offsets = [1, 0], sizes = [1, 8], strides = [1, 1]} : vector<2x8xf32> to vector<1x8xf32>
    %53 = vector.shape_cast %52 : vector<1x8xf32> to vector<1x8xf32>
    %54 = vector.broadcast %53 : vector<1x8xf32> to vector<8x8xf32>
    %55 = tpu.concatenate %45, %48, %51, %54 in 0 : vector<8x8xf32>, vector<8x8xf32>, vector<8x8xf32>, vector<8x8xf32> -> vector<32x8xf32>
    %c128 = arith.constant 128 : index
    %c0_19 = arith.constant 0 : index
    %56 = vector.load %arg3[%c128, %c0_19] : memref<384x128xbf16, #tpu.memory_space<vmem>>, vector<32x96xbf16>
    %57 = arith.truncf %37 : vector<16x32xf32> to vector<16x32xbf16>
    %cst_20 = arith.constant dense<0.000000e+00> : vector<16x96xf32>
    %58 = tpu.matmul %57, %56, %cst_20 {dimension_numbers = #tpu.dot_dimension_numbers<[1], [0], [0], [1], [0, 0, 1, 1], [], []>} : vector<16x32xbf16>, vector<32x96xbf16>, vector<16x96xf32> -> vector<16x96xf32>
    %c2 = arith.constant 2 : index
    %c0_21 = arith.constant 0 : index
    %59 = vector.load %arg2[%c2, %c0_21] : memref<32x128xf32, #tpu.memory_space<vmem>>, vector<1x96xf32>
    %60 = vector.broadcast %59 : vector<1x96xf32> to vector<16x96xf32>
    %61 = arith.addf %58, %60 : vector<16x96xf32>
    %62 = vector.extract_strided_slice %61 {offsets = [0, 0], sizes = [8, 16], strides = [1, 1]} : vector<16x96xf32> to vector<8x16xf32>
    %cst_22 = arith.constant 2.500000e-01 : f32
    %63 = vector.broadcast %cst_22 : f32 to vector<8x16xf32>
    %64 = arith.mulf %62, %63 : vector<8x16xf32>
    %65 = arith.truncf %64 : vector<8x16xf32> to vector<8x16xbf16>
    %66 = vector.extract_strided_slice %61 {offsets = [0, 32], sizes = [8, 16], strides = [1, 1]} : vector<16x96xf32> to vector<8x16xf32>
    %67 = arith.truncf %66 : vector<8x16xf32> to vector<8x16xbf16>
    %68 = vector.extract_strided_slice %61 {offsets = [0, 64], sizes = [8, 16], strides = [1, 1]} : vector<16x96xf32> to vector<8x16xf32>
    %69 = arith.truncf %68 : vector<8x16xf32> to vector<8x16xbf16>
    %cst_23 = arith.constant dense<0.000000e+00> : vector<8x8xf32>
    %70 = tpu.matmul %65, %67, %cst_23 {dimension_numbers = #tpu.dot_dimension_numbers<[1], [1], [0], [0], [0, 0, 1, 0], [], []>} : vector<8x16xbf16>, vector<8x16xbf16>, vector<8x8xf32> -> vector<8x8xf32>
    %71 = vector.extract_strided_slice %61 {offsets = [0, 16], sizes = [8, 16], strides = [1, 1]} : vector<16x96xf32> to vector<8x16xf32>
    %cst_24 = arith.constant 2.500000e-01 : f32
    %72 = vector.broadcast %cst_24 : f32 to vector<8x16xf32>
    %73 = arith.mulf %71, %72 : vector<8x16xf32>
    %74 = arith.truncf %73 : vector<8x16xf32> to vector<8x16xbf16>
    %75 = vector.extract_strided_slice %61 {offsets = [0, 48], sizes = [8, 16], strides = [1, 1]} : vector<16x96xf32> to vector<8x16xf32>
    %76 = arith.truncf %75 : vector<8x16xf32> to vector<8x16xbf16>
    %77 = vector.extract_strided_slice %61 {offsets = [0, 80], sizes = [8, 16], strides = [1, 1]} : vector<16x96xf32> to vector<8x16xf32>
    %78 = arith.truncf %77 : vector<8x16xf32> to vector<8x16xbf16>
    %cst_25 = arith.constant dense<0.000000e+00> : vector<8x8xf32>
    %79 = tpu.matmul %74, %76, %cst_25 {dimension_numbers = #tpu.dot_dimension_numbers<[1], [1], [0], [0], [0, 0, 1, 0], [], []>} : vector<8x16xbf16>, vector<8x16xbf16>, vector<8x8xf32> -> vector<8x8xf32>
    %80 = vector.extract_strided_slice %61 {offsets = [8, 0], sizes = [8, 16], strides = [1, 1]} : vector<16x96xf32> to vector<8x16xf32>
    %cst_26 = arith.constant 2.500000e-01 : f32
    %81 = vector.broadcast %cst_26 : f32 to vector<8x16xf32>
    %82 = arith.mulf %80, %81 : vector<8x16xf32>
    %83 = arith.truncf %82 : vector<8x16xf32> to vector<8x16xbf16>
    %84 = vector.extract_strided_slice %61 {offsets = [8, 32], sizes = [8, 16], strides = [1, 1]} : vector<16x96xf32> to vector<8x16xf32>
    %85 = arith.truncf %84 : vector<8x16xf32> to vector<8x16xbf16>
    %86 = vector.extract_strided_slice %61 {offsets = [8, 64], sizes = [8, 16], strides = [1, 1]} : vector<16x96xf32> to vector<8x16xf32>
    %87 = arith.truncf %86 : vector<8x16xf32> to vector<8x16xbf16>
    %cst_27 = arith.constant dense<0.000000e+00> : vector<8x8xf32>
    %88 = tpu.matmul %83, %85, %cst_27 {dimension_numbers = #tpu.dot_dimension_numbers<[1], [1], [0], [0], [0, 0, 1, 0], [], []>} : vector<8x16xbf16>, vector<8x16xbf16>, vector<8x8xf32> -> vector<8x8xf32>
    %89 = vector.extract_strided_slice %61 {offsets = [8, 16], sizes = [8, 16], strides = [1, 1]} : vector<16x96xf32> to vector<8x16xf32>
    %cst_28 = arith.constant 2.500000e-01 : f32
    %90 = vector.broadcast %cst_28 : f32 to vector<8x16xf32>
    %91 = arith.mulf %89, %90 : vector<8x16xf32>
    %92 = arith.truncf %91 : vector<8x16xf32> to vector<8x16xbf16>
    %93 = vector.extract_strided_slice %61 {offsets = [8, 48], sizes = [8, 16], strides = [1, 1]} : vector<16x96xf32> to vector<8x16xf32>
    %94 = arith.truncf %93 : vector<8x16xf32> to vector<8x16xbf16>
    %95 = vector.extract_strided_slice %61 {offsets = [8, 80], sizes = [8, 16], strides = [1, 1]} : vector<16x96xf32> to vector<8x16xf32>
    %96 = arith.truncf %95 : vector<8x16xf32> to vector<8x16xbf16>
    %cst_29 = arith.constant dense<0.000000e+00> : vector<8x8xf32>
    %97 = tpu.matmul %92, %94, %cst_29 {dimension_numbers = #tpu.dot_dimension_numbers<[1], [1], [0], [0], [0, 0, 1, 0], [], []>} : vector<8x16xbf16>, vector<8x16xbf16>, vector<8x8xf32> -> vector<8x8xf32>
    %98 = tpu.concatenate %70, %79, %88, %97 in 0 : vector<8x8xf32>, vector<8x8xf32>, vector<8x8xf32>, vector<8x8xf32> -> vector<32x8xf32>
    %99 = arith.addf %98, %55 : vector<32x8xf32>
    %cst_30 = arith.constant dense<0xFF800000> : vector<32xf32>
    %100 = vector.multi_reduction <maximumf>, %99, %cst_30 [1] : vector<32x8xf32> to vector<32xf32>
    %101 = vector.shape_cast %100 : vector<32xf32> to vector<32x1xf32>
    %102 = vector.broadcast %101 : vector<32x1xf32> to vector<32x8xf32>
    %103 = arith.subf %99, %102 : vector<32x8xf32>
    %104 = math.exp %103 : vector<32x8xf32>
    %cst_31 = arith.constant dense<0.000000e+00> : vector<32xf32>
    %105 = vector.multi_reduction <add>, %104, %cst_31 [1] : vector<32x8xf32> to vector<32xf32>
    %106 = vector.shape_cast %105 : vector<32xf32> to vector<32x1xf32>
    %107 = tpu.reciprocal %106 {approx = true} : vector<32x1xf32> -> vector<32x1xf32>
    %108 = vector.broadcast %107 : vector<32x1xf32> to vector<32x8xf32>
    %109 = arith.mulf %104, %108 : vector<32x8xf32>
    %110 = arith.truncf %109 : vector<32x8xf32> to vector<32x8xbf16>
    %111 = vector.extract_strided_slice %110 {offsets = [0, 0], sizes = [8, 8], strides = [1, 1]} : vector<32x8xbf16> to vector<8x8xbf16>
    %cst_32 = arith.constant dense<0.000000e+00> : vector<8x16xf32>
    %112 = tpu.matmul %111, %69, %cst_32 {dimension_numbers = #tpu.dot_dimension_numbers<[1], [0], [0], [1], [0, 0, 1, 1], [], []>} : vector<8x8xbf16>, vector<8x16xbf16>, vector<8x16xf32> -> vector<8x16xf32>
    %113 = vector.extract_strided_slice %110 {offsets = [8, 0], sizes = [8, 8], strides = [1, 1]} : vector<32x8xbf16> to vector<8x8xbf16>
    %cst_33 = arith.constant dense<0.000000e+00> : vector<8x16xf32>
    %114 = tpu.matmul %113, %78, %cst_33 {dimension_numbers = #tpu.dot_dimension_numbers<[1], [0], [0], [1], [0, 0, 1, 1], [], []>} : vector<8x8xbf16>, vector<8x16xbf16>, vector<8x16xf32> -> vector<8x16xf32>
    %115 = vector.extract_strided_slice %110 {offsets = [16, 0], sizes = [8, 8], strides = [1, 1]} : vector<32x8xbf16> to vector<8x8xbf16>
    %cst_34 = arith.constant dense<0.000000e+00> : vector<8x16xf32>
    %116 = tpu.matmul %115, %87, %cst_34 {dimension_numbers = #tpu.dot_dimension_numbers<[1], [0], [0], [1], [0, 0, 1, 1], [], []>} : vector<8x8xbf16>, vector<8x16xbf16>, vector<8x16xf32> -> vector<8x16xf32>
    %117 = vector.extract_strided_slice %110 {offsets = [24, 0], sizes = [8, 8], strides = [1, 1]} : vector<32x8xbf16> to vector<8x8xbf16>
    %cst_35 = arith.constant dense<0.000000e+00> : vector<8x16xf32>
    %118 = tpu.matmul %117, %96, %cst_35 {dimension_numbers = #tpu.dot_dimension_numbers<[1], [0], [0], [1], [0, 0, 1, 1], [], []>} : vector<8x8xbf16>, vector<8x16xbf16>, vector<8x16xf32> -> vector<8x16xf32>
    %119 = tpu.concatenate %112, %114 in 1 : vector<8x16xf32>, vector<8x16xf32> -> vector<8x32xf32>
    %120 = tpu.concatenate %116, %118 in 1 : vector<8x16xf32>, vector<8x16xf32> -> vector<8x32xf32>
    %121 = tpu.concatenate %119, %120 in 0 : vector<8x32xf32>, vector<8x32xf32> -> vector<16x32xf32>
    %c160 = arith.constant 160 : index
    %c0_36 = arith.constant 0 : index
    %122 = vector.load %arg3[%c160, %c0_36] : memref<384x128xbf16, #tpu.memory_space<vmem>>, vector<32x32xbf16>
    %123 = arith.truncf %121 : vector<16x32xf32> to vector<16x32xbf16>
    %cst_37 = arith.constant dense<0.000000e+00> : vector<16x32xf32>
    %124 = tpu.matmul %123, %122, %cst_37 {dimension_numbers = #tpu.dot_dimension_numbers<[1], [0], [0], [1], [0, 0, 1, 1], [], []>} : vector<16x32xbf16>, vector<32x32xbf16>, vector<16x32xf32> -> vector<16x32xf32>
    %c3 = arith.constant 3 : index
    %c0_38 = arith.constant 0 : index
    %125 = vector.load %arg2[%c3, %c0_38] : memref<32x128xf32, #tpu.memory_space<vmem>>, vector<1x32xf32>
    %126 = vector.broadcast %125 : vector<1x32xf32> to vector<16x32xf32>
    %127 = arith.addf %124, %126 : vector<16x32xf32>
    %128 = arith.addf %37, %127 : vector<16x32xf32>
    %c4 = arith.constant 4 : index
    %c0_39 = arith.constant 0 : index
    %129 = vector.load %arg2[%c4, %c0_39] : memref<32x128xf32, #tpu.memory_space<vmem>>, vector<1x32xf32>
    %c5 = arith.constant 5 : index
    %c0_40 = arith.constant 0 : index
    %130 = vector.load %arg2[%c5, %c0_40] : memref<32x128xf32, #tpu.memory_space<vmem>>, vector<1x32xf32>
    %cst_41 = arith.constant dense<0.000000e+00> : vector<16xf32>
    %131 = vector.multi_reduction <add>, %128, %cst_41 [1] : vector<16x32xf32> to vector<16xf32>
    %132 = vector.shape_cast %131 : vector<16xf32> to vector<16x1xf32>
    %cst_42 = arith.constant 3.200000e+01 : f32
    %133 = vector.broadcast %cst_42 : f32 to vector<16x1xf32>
    %134 = arith.divf %132, %133 : vector<16x1xf32>
    %135 = arith.mulf %128, %128 : vector<16x32xf32>
    %cst_43 = arith.constant dense<0.000000e+00> : vector<16xf32>
    %136 = vector.multi_reduction <add>, %135, %cst_43 [1] : vector<16x32xf32> to vector<16xf32>
    %137 = vector.shape_cast %136 : vector<16xf32> to vector<16x1xf32>
    %cst_44 = arith.constant 3.200000e+01 : f32
    %138 = vector.broadcast %cst_44 : f32 to vector<16x1xf32>
    %139 = arith.divf %137, %138 : vector<16x1xf32>
    %140 = arith.mulf %134, %134 : vector<16x1xf32>
    %141 = arith.subf %139, %140 : vector<16x1xf32>
    %cst_45 = arith.constant 0.000000e+00 : f32
    %142 = vector.broadcast %cst_45 : f32 to vector<16x1xf32>
    %143 = arith.maximumf %141, %142 : vector<16x1xf32>
    %144 = vector.broadcast %134 : vector<16x1xf32> to vector<16x32xf32>
    %145 = arith.subf %128, %144 : vector<16x32xf32>
    %cst_46 = arith.constant 9.99999996E-13 : f32
    %146 = vector.broadcast %cst_46 : f32 to vector<16x1xf32>
    %147 = arith.addf %143, %146 : vector<16x1xf32>
    %148 = math.rsqrt %147 : vector<16x1xf32>
    %149 = vector.broadcast %148 : vector<16x1xf32> to vector<16x32xf32>
    %150 = arith.mulf %145, %149 : vector<16x32xf32>
    %151 = vector.broadcast %129 : vector<1x32xf32> to vector<16x32xf32>
    %152 = arith.mulf %150, %151 : vector<16x32xf32>
    %153 = vector.broadcast %130 : vector<1x32xf32> to vector<16x32xf32>
    %154 = arith.addf %152, %153 : vector<16x32xf32>
    %c192 = arith.constant 192 : index
    %c0_47 = arith.constant 0 : index
    %155 = vector.load %arg3[%c192, %c0_47] : memref<384x128xbf16, #tpu.memory_space<vmem>>, vector<32x64xbf16>
    %156 = arith.truncf %154 : vector<16x32xf32> to vector<16x32xbf16>
    %cst_48 = arith.constant dense<0.000000e+00> : vector<16x64xf32>
    %157 = tpu.matmul %156, %155, %cst_48 {dimension_numbers = #tpu.dot_dimension_numbers<[1], [0], [0], [1], [0, 0, 1, 1], [], []>} : vector<16x32xbf16>, vector<32x64xbf16>, vector<16x64xf32> -> vector<16x64xf32>
    %c6 = arith.constant 6 : index
    %c0_49 = arith.constant 0 : index
    %158 = vector.load %arg2[%c6, %c0_49] : memref<32x128xf32, #tpu.memory_space<vmem>>, vector<1x64xf32>
    %159 = vector.broadcast %158 : vector<1x64xf32> to vector<16x64xf32>
    %160 = arith.addf %157, %159 : vector<16x64xf32>
    %161 = arith.mulf %160, %160 : vector<16x64xf32>
    %162 = arith.mulf %160, %161 : vector<16x64xf32>
    %cst_50 = arith.constant 4.471500e-02 : f32
    %163 = vector.broadcast %cst_50 : f32 to vector<16x64xf32>
    %164 = arith.mulf %163, %162 : vector<16x64xf32>
    %165 = arith.addf %160, %164 : vector<16x64xf32>
    %cst_51 = arith.constant 0.797884583 : f32
    %166 = vector.broadcast %cst_51 : f32 to vector<16x64xf32>
    %167 = arith.mulf %166, %165 : vector<16x64xf32>
    %168 = math.tanh %167 : vector<16x64xf32>
    %cst_52 = arith.constant 1.000000e+00 : f32
    %169 = vector.broadcast %cst_52 : f32 to vector<16x64xf32>
    %170 = arith.addf %169, %168 : vector<16x64xf32>
    %cst_53 = arith.constant 5.000000e-01 : f32
    %171 = vector.broadcast %cst_53 : f32 to vector<16x64xf32>
    %172 = arith.mulf %171, %170 : vector<16x64xf32>
    %173 = arith.mulf %160, %172 : vector<16x64xf32>
    %c224 = arith.constant 224 : index
    %c0_54 = arith.constant 0 : index
    %174 = vector.load %arg3[%c224, %c0_54] : memref<384x128xbf16, #tpu.memory_space<vmem>>, vector<64x32xbf16>
    %175 = arith.truncf %173 : vector<16x64xf32> to vector<16x64xbf16>
    %cst_55 = arith.constant dense<0.000000e+00> : vector<16x32xf32>
    %176 = tpu.matmul %175, %174, %cst_55 {dimension_numbers = #tpu.dot_dimension_numbers<[1], [0], [0], [1], [0, 0, 1, 1], [], []>} : vector<16x64xbf16>, vector<64x32xbf16>, vector<16x32xf32> -> vector<16x32xf32>
    %c7 = arith.constant 7 : index
    %c0_56 = arith.constant 0 : index
    %177 = vector.load %arg2[%c7, %c0_56] : memref<32x128xf32, #tpu.memory_space<vmem>>, vector<1x32xf32>
    %178 = vector.broadcast %177 : vector<1x32xf32> to vector<16x32xf32>
    %179 = arith.addf %176, %178 : vector<16x32xf32>
    %180 = arith.addf %154, %179 : vector<16x32xf32>
    %c8 = arith.constant 8 : index
    %c0_57 = arith.constant 0 : index
    %181 = vector.load %arg2[%c8, %c0_57] : memref<32x128xf32, #tpu.memory_space<vmem>>, vector<1x32xf32>
    %c9 = arith.constant 9 : index
    %c0_58 = arith.constant 0 : index
    %182 = vector.load %arg2[%c9, %c0_58] : memref<32x128xf32, #tpu.memory_space<vmem>>, vector<1x32xf32>
    %cst_59 = arith.constant dense<0.000000e+00> : vector<16xf32>
    %183 = vector.multi_reduction <add>, %180, %cst_59 [1] : vector<16x32xf32> to vector<16xf32>
    %184 = vector.shape_cast %183 : vector<16xf32> to vector<16x1xf32>
    %cst_60 = arith.constant 3.200000e+01 : f32
    %185 = vector.broadcast %cst_60 : f32 to vector<16x1xf32>
    %186 = arith.divf %184, %185 : vector<16x1xf32>
    %187 = arith.mulf %180, %180 : vector<16x32xf32>
    %cst_61 = arith.constant dense<0.000000e+00> : vector<16xf32>
    %188 = vector.multi_reduction <add>, %187, %cst_61 [1] : vector<16x32xf32> to vector<16xf32>
    %189 = vector.shape_cast %188 : vector<16xf32> to vector<16x1xf32>
    %cst_62 = arith.constant 3.200000e+01 : f32
    %190 = vector.broadcast %cst_62 : f32 to vector<16x1xf32>
    %191 = arith.divf %189, %190 : vector<16x1xf32>
    %192 = arith.mulf %186, %186 : vector<16x1xf32>
    %193 = arith.subf %191, %192 : vector<16x1xf32>
    %cst_63 = arith.constant 0.000000e+00 : f32
    %194 = vector.broadcast %cst_63 : f32 to vector<16x1xf32>
    %195 = arith.maximumf %193, %194 : vector<16x1xf32>
    %196 = vector.broadcast %186 : vector<16x1xf32> to vector<16x32xf32>
    %197 = arith.subf %180, %196 : vector<16x32xf32>
    %cst_64 = arith.constant 9.99999996E-13 : f32
    %198 = vector.broadcast %cst_64 : f32 to vector<16x1xf32>
    %199 = arith.addf %195, %198 : vector<16x1xf32>
    %200 = math.rsqrt %199 : vector<16x1xf32>
    %201 = vector.broadcast %200 : vector<16x1xf32> to vector<16x32xf32>
    %202 = arith.mulf %197, %201 : vector<16x32xf32>
    %203 = vector.broadcast %181 : vector<1x32xf32> to vector<16x32xf32>
    %204 = arith.mulf %202, %203 : vector<16x32xf32>
    %205 = vector.broadcast %182 : vector<1x32xf32> to vector<16x32xf32>
    %206 = arith.addf %204, %205 : vector<16x32xf32>
    %207 = vector.extract_strided_slice %206 {offsets = [0, 0], sizes = [1, 32], strides = [1, 1]} : vector<16x32xf32> to vector<1x32xf32>
    %208 = vector.extract_strided_slice %206 {offsets = [8, 0], sizes = [1, 32], strides = [1, 1]} : vector<16x32xf32> to vector<1x32xf32>
    %209 = tpu.concatenate %207, %208 in 0 : vector<1x32xf32>, vector<1x32xf32> -> vector<2x32xf32>
    %c288 = arith.constant 288 : index
    %c0_65 = arith.constant 0 : index
    %210 = vector.load %arg3[%c288, %c0_65] : memref<384x128xbf16, #tpu.memory_space<vmem>>, vector<32x96xbf16>
    %211 = arith.truncf %209 : vector<2x32xf32> to vector<2x32xbf16>
    %cst_66 = arith.constant dense<0.000000e+00> : vector<2x96xf32>
    %212 = tpu.matmul %211, %210, %cst_66 {dimension_numbers = #tpu.dot_dimension_numbers<[1], [0], [0], [1], [0, 0, 1, 1], [], []>} : vector<2x32xbf16>, vector<32x96xbf16>, vector<2x96xf32> -> vector<2x96xf32>
    %c10 = arith.constant 10 : index
    %c0_67 = arith.constant 0 : index
    %213 = vector.load %arg2[%c10, %c0_67] : memref<32x128xf32, #tpu.memory_space<vmem>>, vector<1x96xf32>
    %214 = vector.broadcast %213 : vector<1x96xf32> to vector<2x96xf32>
    %215 = arith.addf %212, %214 : vector<2x96xf32>
    %216 = vector.extract_strided_slice %215 {offsets = [0, 0], sizes = [2, 32], strides = [1, 1]} : vector<2x96xf32> to vector<2x32xf32>
    %217 = arith.negf %216 : vector<2x32xf32>
    %218 = math.exp %217 : vector<2x32xf32>
    %cst_68 = arith.constant 1.000000e+00 : f32
    %219 = vector.broadcast %cst_68 : f32 to vector<2x32xf32>
    %220 = arith.addf %219, %218 : vector<2x32xf32>
    %221 = arith.divf %219, %220 : vector<2x32xf32>
    %222 = vector.extract_strided_slice %215 {offsets = [0, 32], sizes = [2, 32], strides = [1, 1]} : vector<2x96xf32> to vector<2x32xf32>
    %223 = math.tanh %222 : vector<2x32xf32>
    %224 = vector.extract_strided_slice %215 {offsets = [0, 64], sizes = [2, 32], strides = [1, 1]} : vector<2x96xf32> to vector<2x32xf32>
    %225 = arith.negf %224 : vector<2x32xf32>
    %226 = math.exp %225 : vector<2x32xf32>
    %cst_69 = arith.constant 1.000000e+00 : f32
    %227 = vector.broadcast %cst_69 : f32 to vector<2x32xf32>
    %228 = arith.addf %227, %226 : vector<2x32xf32>
    %229 = arith.divf %227, %228 : vector<2x32xf32>
    %230 = arith.mulf %221, %223 : vector<2x32xf32>
    %231 = math.tanh %230 : vector<2x32xf32>
    %232 = arith.mulf %229, %231 : vector<2x32xf32>
    %c320 = arith.constant 320 : index
    %c0_70 = arith.constant 0 : index
    %233 = vector.load %arg3[%c320, %c0_70] : memref<384x128xbf16, #tpu.memory_space<vmem>>, vector<32x96xbf16>
    %234 = arith.truncf %232 : vector<2x32xf32> to vector<2x32xbf16>
    %cst_71 = arith.constant dense<0.000000e+00> : vector<2x96xf32>
    %235 = tpu.matmul %234, %233, %cst_71 {dimension_numbers = #tpu.dot_dimension_numbers<[1], [0], [0], [1], [0, 0, 1, 1], [], []>} : vector<2x32xbf16>, vector<32x96xbf16>, vector<2x96xf32> -> vector<2x96xf32>
    %c11 = arith.constant 11 : index
    %c0_72 = arith.constant 0 : index
    %236 = vector.load %arg2[%c11, %c0_72] : memref<32x128xf32, #tpu.memory_space<vmem>>, vector<1x96xf32>
    %237 = vector.broadcast %236 : vector<1x96xf32> to vector<2x96xf32>
    %238 = arith.addf %235, %237 : vector<2x96xf32>
    %239 = vector.extract_strided_slice %238 {offsets = [0, 0], sizes = [2, 32], strides = [1, 1]} : vector<2x96xf32> to vector<2x32xf32>
    %240 = arith.negf %239 : vector<2x32xf32>
    %241 = math.exp %240 : vector<2x32xf32>
    %cst_73 = arith.constant 1.000000e+00 : f32
    %242 = vector.broadcast %cst_73 : f32 to vector<2x32xf32>
    %243 = arith.addf %242, %241 : vector<2x32xf32>
    %244 = arith.divf %242, %243 : vector<2x32xf32>
    %245 = vector.extract_strided_slice %238 {offsets = [0, 32], sizes = [2, 32], strides = [1, 1]} : vector<2x96xf32> to vector<2x32xf32>
    %246 = math.tanh %245 : vector<2x32xf32>
    %247 = vector.extract_strided_slice %238 {offsets = [0, 64], sizes = [2, 32], strides = [1, 1]} : vector<2x96xf32> to vector<2x32xf32>
    %248 = arith.negf %247 : vector<2x32xf32>
    %249 = math.exp %248 : vector<2x32xf32>
    %cst_74 = arith.constant 1.000000e+00 : f32
    %250 = vector.broadcast %cst_74 : f32 to vector<2x32xf32>
    %251 = arith.addf %250, %249 : vector<2x32xf32>
    %252 = arith.divf %250, %251 : vector<2x32xf32>
    %253 = arith.mulf %244, %246 : vector<2x32xf32>
    %254 = math.tanh %253 : vector<2x32xf32>
    %255 = arith.mulf %252, %254 : vector<2x32xf32>
    %c352 = arith.constant 352 : index
    %c0_75 = arith.constant 0 : index
    %256 = vector.load %arg3[%c352, %c0_75] : memref<384x128xbf16, #tpu.memory_space<vmem>>, vector<32x1xbf16>
    %257 = arith.truncf %255 : vector<2x32xf32> to vector<2x32xbf16>
    %cst_76 = arith.constant dense<0.000000e+00> : vector<2x1xf32>
    %258 = tpu.matmul %257, %256, %cst_76 {dimension_numbers = #tpu.dot_dimension_numbers<[1], [0], [0], [1], [0, 0, 1, 1], [], []>} : vector<2x32xbf16>, vector<32x1xbf16>, vector<2x1xf32> -> vector<2x1xf32>
    %c12 = arith.constant 12 : index
    %c0_77 = arith.constant 0 : index
    %259 = vector.load %arg2[%c12, %c0_77] : memref<32x128xf32, #tpu.memory_space<vmem>>, vector<1x1xf32>
    %260 = vector.broadcast %259 : vector<1x1xf32> to vector<2x1xf32>
    %261 = arith.addf %258, %260 : vector<2x1xf32>
    %c0_78 = arith.constant 0 : index
    %c0_79 = arith.constant 0 : index
    %262 = vector.load %arg4[%c0_78, %c0_79] : memref<2x1xf32, #tpu.memory_space<vmem>>, vector<2x1xf32>
    tpu.vector_store %arg4[%c0_78, %c0_79], %261 {strides = array<i32>} : memref<2x1xf32, #tpu.memory_space<vmem>>, vector<2x1xf32>,
    return
  }
}

</mosaic_0001>

<bundles_post_ra>
// kernel: forward.1
= control target key start
LH: loop header
LB: loop body
LE: loop exit
PB: predicated region body
PF: predicated region fallthrough
CT: control target
= control target key end

     0   :  { %9 = vsyncpa [#allocation3], 0  ;;  %s1928_s0 = inlined_call_operand.vmem [shape: s32[16,1], index: 0, kind: input, shape index: {}]   ;;  %s1929_s1 = inlined_call_operand.vmem [shape: f32[2,8], index: 1, kind: input, shape index: {}]   ;;  %s1930_s2 = inlined_call_operand.hbm [shape: f32[32,128], index: 2, kind: input, shape index: {}]   ;;  %s1931_s3 = inlined_call_operand.hbm [shape: bf16[384,128], index: 3, kind: input, shape index: {}]   ;;  %s1932_s4 = inlined_call_operand.vmem [shape: f32[2,1], index: 4, kind: output, shape index: {}]  }
   0x1   :  { %10 = vsyncpa [#allocation5], 0  ;;  %s1710_s15 = smov [#allocation2]   ;;  %s1662_s19 = scalar_lea.hbm %s1930_s2, 512 }
   0x2   :  { %s20_s16 = sshll.u32 %s1710_s15, 4  ;;  %p1663_p0 = scmp.ne.s32.totalorder %s1930_s2, %s1662_s19  ;;  %s21_s16 = int_to_ptr.vmem [resolvable:$true] %s20_s16 }
   0x3   :  { %p1666_p1 = scmp.lt.u32.totalorder %s1662_s19, %s1930_s2 }
   0x5   :  { %p1668_p2 = pnand %p1666_p1, %p1663_p0 }
   0x7   :  { %1671 = shalt.err (!%p1668_p2)
}
   0x8   :  { %s1672_s24 = scalar_lea.vmem %s21_s16, 512  ;;  %p1677_p4 = scmp.lt.s32.totalorder %s21_s16, %s21_s16 }
   0x9   :  { %p1673_p3 = scmp.ne.s32.totalorder %s21_s16, %s1672_s24  ;;  %p1678_p5 = scmp.lt.s32.totalorder %s1672_s24, %s1672_s24 }
   0xb   :  { %p1679_p6 = por %p1678_p5, %p1677_p4 }
   0xd   :  { %p1680_p7 = pnand %p1679_p6, %p1673_p3 }
   0xf   :  { %1683 = shalt.err (!%p1680_p7)
}
  0x10   :  { %s1711_s25 = smov 128   ;;  %s1712_s26 = smov 8  }
  0x11   :  { %26 = dma.hbm_to_vmem [thread:$0]  %s1930_s2, 512, %s21_s16, [#allocation3], %s1711_s25, %s1711_s25, %s1712_s26  }
  0x12   :  { %s1713_s29 = smov [#allocation4]   ;;  %s1684_s7 = scalar_lea.hbm %s1931_s3, 3072 }
  0x13   :  { %s32_s30 = sshll.u32 %s1713_s29, 4  ;;  %p1685_p8 = scmp.ne.s32.totalorder %s1931_s3, %s1684_s7  ;;  %s33_s30 = int_to_ptr.vmem [resolvable:$true] %s32_s30 }
  0x14   :  { %p1688_p9 = scmp.lt.u32.totalorder %s1684_s7, %s1931_s3 }
  0x16   :  { %p1690_p10 = pnand %p1688_p9, %p1685_p8 }
  0x18   :  { %1693 = shalt.err (!%p1690_p10)
}
  0x19   :  { %s1694_s12 = scalar_lea.vmem %s33_s30, 3072  ;;  %p1699_p12 = scmp.lt.s32.totalorder %s33_s30, %s33_s30 }
  0x1a   :  { %p1695_p11 = scmp.ne.s32.totalorder %s33_s30, %s1694_s12  ;;  %p1700_p13 = scmp.lt.s32.totalorder %s1694_s12, %s1694_s12 }
  0x1c   :  { %p1701_p0 = por %p1700_p13, %p1699_p12 }
  0x1e   :  { %p1702_p1 = pnand %p1701_p0, %p1695_p11 }
  0x20   :  { %1705 = shalt.err (!%p1702_p1)
}
  0x21   :  { %s1714_s2 = smov 64   ;;  %s1715_s13 = smov 4  }
  0x22   :  { %38 = dma.hbm_to_vmem [thread:$0]  %s1931_s3, 3072, %s33_s30, [#allocation5], %s1714_s2, %s1714_s2, %s1715_s13  }
  0x23   :  { %1706 = dma.done.wait [#allocation3], 512  }
  0x24   :  { %1707 = vsyncadd [#allocation3], 4294966784 }
  0x25   :  { %1708 = dma.done.wait [#allocation5], 3072  }
  0x26   :  { %1709 = vsyncadd [#allocation5], 4294964224  ;;  %v1716_v0 = vmov 0   ;;  %v1717_v1 = vmov 0.0   ;;  %v48_v2 = vld [vmem:[%s1928_s0] sm:$0xff]  ;;  %v49_v4 = vld [vmem:[%s1928_s0 + $0x8] sm:$0xff]  ;;  %v46_v12 = vlaneseq }
  0x27   :  { %1584 = vset.pattern.permute.xlu0 %v1716_v0  ;;  %1441 = vmatprep.subr.bf16.mxu0 %v1717_v1  ;;  %v1590_v3 = vld [vmem:[#allocation4] sm:$0xff]   ;;  %v1591_v5 = vld [vmem:[#allocation4 + $0x8] sm:$0xff]   ;;  %vm1718_vm0 = vmmov 0   ;;  %v1592_v6 = vld [vmem:[#allocation4 + $0x10] sm:$0xff]   ;;  %v1719_v16 = vmov 1.0|1.0  }
  0x28   :  { %1461 = vmatprep.subr.bf16.mxu1 %v1717_v1  ;;  %51 = vperm.xlu0 %1584, %v48_v2   ;;  %v1593_v7 = vld [vmem:[#allocation4 + $0x18] sm:$0xff]   ;;  %v1594_v8 = vld [vmem:[#allocation4 + $0x20] sm:$0xff]   ;;  %v1595_v9 = vld [vmem:[#allocation4 + $0x28] sm:$0xff]   ;;  %v47_v14 = vand.u32 127, %v46_v12  ;;  %vm170_vm4 = vcmask 261120   ;;  %s1720_s0 = smov 96  }
  0x29   :  { %1442 = vmatpush3.bf16.msra.mxu0 %v1590_v3  ;;  %1457 = vmatprep.mubr.msk.bf16.mxu0 %vm1718_vm0, %v1717_v1  ;;  %v1596_v10 = vld [vmem:[#allocation4 + $0x30] sm:$0xff]   ;;  %v1597_v11 = vld [vmem:[#allocation4 + $0x38] sm:$0xff]   ;;  %v1598_v31 = vld [vmem:[#allocation4 + $0x40] sm:$0xff]   ;;  %s1721_s3 = smov 80   ;;  %s1722_s20 = smov 112   ;;  %vm299_vm5 = vcmask 130048  }
  0x2a   :  { %1443 = vmatprep.subr.bf16.mxu0 %v1717_v1  ;;  %1465 = vmatprep.mubr.msk.bf16.mxu1 %vm1718_vm0, %v1717_v1  ;;  %v77_v17 = vld [vmem:[#allocation2 + $0x10] sm:$0xff]  ;;  %v78_v19 = vld [vmem:[#allocation2 + $0x18] sm:$0xff]  ;;  %v1599_v32 = vld [vmem:[#allocation4 + $0x48] sm:$0xff]   ;;  %vm504_vm6 = vcmask 64512   ;;  %vm556_vm7 = vcmask 1043456   ;;  %s1724_s23 = smov 16  }
  0x2b   :  { %1462 = vmatpush3.bf16.msra.mxu1 %v1598_v31  ;;  %v1347_v52 = vld [vmem:[#allocation2] ss:$0 sm:$0xff]  ;;  %v1348_v57 = vld [vmem:[#allocation2 + $0x1] ss:$0 sm:$0xff]  ;;  %v1349_v62 = vld [vmem:[#allocation2 + $0x2] ss:$0 sm:$0xff] }
  0x2c   :  { %54 = vperm.xlu0 %1584, %v49_v4   ;;  %1463 = vmatprep.subr.bf16.mxu1 %v1717_v1  ;;  %vm994_vm8 = vcmask 523264   ;;  %vm1090_vm9 = vcmask 1040384   ;;  %vm1329_vm10 = vcmask 1024  }
  0x2d   :  { %1444 = vmatpush3.bf16.msra.mxu0 %v1591_v5 }
  0x2e   :  { %1445 = vmatprep.subr.bf16.mxu0 %v1717_v1 }
  0x2f   :  { %1464 = vmatpush3.bf16.msra.mxu1 %v1599_v32 }
  0x30   :  { %1469 = vmatprep.subr.bf16.mxu1 %v1717_v1 }
  0x31   :  { %1446 = vmatpush3.bf16.msra.mxu0 %v1592_v6 }
  0x32   :  { %1447 = vmatprep.subr.bf16.mxu0 %v1717_v1 }
  0x35   :  { %1448 = vmatpush3.bf16.msra.mxu0 %v1593_v7 }
  0x36   :  { %1449 = vmatprep.subr.bf16.mxu0 %v1717_v1 }
  0x39   :  { %1450 = vmatpush3.bf16.msra.mxu0 %v1594_v8 }
  0x3a   :  { %1451 = vmatprep.subr.bf16.mxu0 %v1717_v1 }
  0x3d   :  { %1452 = vmatpush3.bf16.msra.mxu0 %v1595_v9 }
  0x3e   :  { %1453 = vmatprep.subr.bf16.mxu0 %v1717_v1 }
  0x41   :  { %1454 = vmatpush3.bf16.msra.mxu0 %v1596_v10 }
  0x42   :  { %1455 = vmatprep.subr.bf16.mxu0 %v1717_v1 }
  0x45   :  { %1456 = vmatpush3.bf16.msra.mxu0 %v1597_v11 }
  0x46   :  { %1487 = vmatprep.subr.bf16.mxu0 %v1717_v1 }
  0xa7   :  { %v52_v13 = vpop.permute.xlu0 %51 }
  0xa8   :  { %vm56_vm1 = vcmp.eq.s32.totalorder %v52_v13, %v47_v14 }
  0xab   :  { %v55_v15 = vpop.permute.xlu0 %54 }
  0xac   :  { %vm57_vm2 = vcmp.eq.s32.totalorder %v55_v15, %v47_v14 }
  0xad   :  { %vm1345_vm3 = vmpackc.low %vm57_vm2, %vm56_vm1 }
  0xae   :  { %1458 = vmatmul.mubr.msk.bf16.vlgmr.msra.gmra.mrb[0].mxu0 %vm1345_vm3, %v1719_v16 }
  0xaf   :  { %1489 = vmatprep.mubr.msk.bf16.mxu0 %vm1718_vm0, %v1717_v1 }
 0x181   :  { %v161_v18 = vpop.f32.mrb[0].mxu0 }
 0x182   :  { %v162_v20 = vadd.f32 %v161_v18, %v77_v17  ;;  %v1459_v21 = vpop.f32.mrb[1].mxu0 }
 0x183   :  { %v164_v22 = vpop.f32.mrb[2].mxu0 }
 0x184   :  { %v165_v23 = vadd.f32 %v164_v22, %v78_v19  ;;  %v1460_v24 = vpop.f32.mrb[3].mxu0  ;;  %v171_v25 = vsel %vm170_vm4, %v162_v20, 0.0  ;;  %v180_v26 = vmul.f32 %v162_v20, %v162_v20 }
 0x185   :  { %172 = vadd.xlane.f32.xlu1 %v171_v25  ;;  %v220_v25 = vshrl.u32 %v46_v12, 7 }
 0x186   :  { %v182_v27 = vsel %vm170_vm4, %v180_v26, 0.0  ;;  %v174_v28 = vsel %vm170_vm4, %v165_v23, 0.0  ;;  %v181_v29 = vmul.f32 %v165_v23, %v165_v23 }
 0x187   :  { %183 = vadd.xlane.f32.xlu0 %v182_v27  ;;  %v221_v27 = vsub.s32 0, %v220_v25  ;;  %v225_v12 = vsub.s32 1, %v220_v25 }
 0x188   :  { %v185_v30 = vsel %vm170_vm4, %v181_v29, 0.0 }
 0x189   :  { %175 = vadd.xlane.f32.xlu1 %v174_v28 }
 0x18d   :  { %186 = vadd.xlane.f32.xlu1 %v185_v30 }
 0x212   :  { %v173_v33 = vpop.xlane.xlu1 %172 }
 0x213   :  { %v178_v34 = vmul.f32 0.03125, %v173_v33 }
 0x214   :  { %v184_v35 = vpop.xlane.xlu0 %183 }
 0x215   :  { %v190_v36 = vmul.f32 %v178_v34, %v178_v34  ;;  %v188_v37 = vmul.f32 0.03125, %v184_v35  ;;  %v196_v50 = vsub.f32 %v162_v20, %v178_v34 }
 0x216   :  { %v176_v38 = vpop.xlane.xlu1 %175 }
 0x217   :  { %v192_v39 = vsub.f32 %v188_v37, %v190_v36  ;;  %v179_v40 = vmul.f32 0.03125, %v176_v38 }
 0x219   :  { %v194_v41 = vmax.f32 %v192_v39, 0.0  ;;  %v191_v44 = vmul.f32 %v179_v40, %v179_v40  ;;  %v197_v53 = vsub.f32 %v165_v23, %v179_v40  ;;  %v216_v23 = vld [vmem:[%s1929_s1] sm:$0x3]  ;;  %s1723_s1 = smov 48  }
 0x21a   :  { %v187_v42 = vpop.xlane.xlu1 %186  ;;  %v217_v24 = vsub.f32 1.0, %v216_v23 }
 0x21b   :  { %v198_v43 = vadd.f32 1e-12, %v194_v41  ;;  %v189_v45 = vmul.f32 0.03125, %v187_v42 }
 0x21c   :  { %v218_v26 = vmul.f32 -1e+09, %v217_v24 }
 0x21d   :  { %1614 = vrsqrt.f32 %v198_v43  ;;  %v193_v46 = vsub.f32 %v189_v45, %v191_v44 }
 0x21e   :  { %v222_v28 = vrot.slane %v218_v26, %v221_v27  ;;  %v226_v45 = vrot.slane %v218_v26, %v225_v12 }
 0x21f   :  { %v195_v47 = vmax.f32 %v193_v46, 0.0 }
 0x221   :  { %v199_v48 = vadd.f32 1e-12, %v195_v47 }
 0x223   :  { %1616 = vrsqrt.f32 %v199_v48 }
 0x227   :  { %v1615_v49 = vpop.eup %1614 }
 0x228   :  { %v202_v51 = vmul.f32 %v1615_v49, %v196_v50 }
 0x22a   :  { %v208_v56 = vmul.f32 %v1347_v52, %v202_v51 }
 0x22c   :  { %v1805_v59 = vadd.f32 %v1348_v57, %v208_v56 }
 0x22d   :  { %v1617_v54 = vpop.eup %1616 }
 0x22e   :  { %v203_v55 = vmul.f32 %v1617_v54, %v197_v53 }
 0x230   :  { %v209_v58 = vmul.f32 %v1347_v52, %v203_v55 }
 0x232   :  { %v1807_v60 = vadd.f32 %v1348_v57, %v209_v58 }
 0x234   :  { %v231_v61 = vpack.c.bf16 %v1807_v60, %v1805_v59 }
 0x236   :  { %1466 = vmatmul.mubr.msk.bf16.vlgmr.msra.gmra.mrb[0].mxu1 %vm170_vm4, %v231_v61 }
 0x237   :  { %1471 = vmatprep.mubr.msk.bf16.mxu1 %vm1718_vm0, %v1717_v1 }
 0x309   :  { %v286_v63 = vpop.f32.mrb[0].mxu1 }
 0x30a   :  { %v287_v0 = vadd.f32 %v1349_v62, %v286_v63  ;;  %v1467_v2 = vpop.f32.mrb[1].mxu1 }
 0x30b   :  { %v289_v3 = vpop.f32.mrb[2].mxu1 }
 0x30c   :  { %v1814_v4 = vpack.c.bf16 %v287_v0, %v287_v0  ;;  %v290_v5 = vadd.f32 %v1349_v62, %v289_v3  ;;  %v1468_v6 = vpop.f32.mrb[3].mxu1  ;;  %v293_v8 = vmul.f32 0.25, %v287_v0 }
 0x30e   :  { %v1816_v7 = vpack.c.bf16 %v290_v5, %v290_v5  ;;  %297 = vrot.lane.b32.xlu1 %v1814_v4, %s1720_s0  ;;  %v294_v9 = vpack.c.bf16 %v293_v8, %v293_v8  ;;  %v397_v10 = vmul.f32 0.25, %v290_v5 }
 0x310   :  { %452 = vrot.lane.b32.xlu0 %v1816_v7, %s1721_s3  ;;  %v398_v11 = vpack.c.bf16 %v397_v10, %v397_v10 }
 0x312   :  { %349 = vrot.lane.b32.xlu1 %v1814_v4, %s1721_s3 }
 0x316   :  { %347 = vrot.lane.b32.xlu1 %v294_v9, %s1722_s20 }
 0x31a   :  { %401 = vrot.lane.b32.xlu1 %v1816_v7, %s1720_s0 }
 0x31e   :  { %450 = vrot.lane.b32.xlu1 %v398_v11, %s1722_s20 }
 0x380   :  { %v298_v13 = vpop.permute.xlu1 %297 }
 0x381   :  { %v304_v14 = vsel %vm299_vm5, %v298_v13, 0 }
 0x382   :  { %1470 = vmatpush3.bf16.xpose.msra.mxu1 %v304_v14  ;;  %v453_v15 = vpop.permute.xlu0 %452 }
 0x383   :  { %v458_v16 = vsel %vm299_vm5, %v453_v15, 0  ;;  %1475 = vmatprep.subr.bf16.mxu1 %v1717_v1 }
 0x384   :  { %v350_v17 = vpop.permute.xlu1 %349  ;;  %1488 = vmatpush3.bf16.xpose.msra.mxu0 %v458_v16 }
 0x385   :  { %1499 = vmatprep.subr.bf16.mxu0 %v1717_v1  ;;  %v355_v19 = vsel %vm299_vm5, %v350_v17, 0 }
 0x388   :  { %v348_v18 = vpop.permute.xlu1 %347 }
 0x389   :  { %1472 = vmatmul.mubr.msk.bf16.vlgmr.msra.gmra.mrb[4].mxu1 %vm299_vm5, %v294_v9 }
 0x38a   :  { %1476 = vmatpush3.bf16.xpose.msra.mxu1 %v355_v19  ;;  %1477 = vmatprep.mubr.msk.bf16.mxu1 %vm1718_vm0, %v1717_v1 }
 0x38b   :  { %1481 = vmatprep.subr.bf16.mxu1 %v1717_v1 }
 0x38c   :  { %v402_v20 = vpop.permute.xlu1 %401 }
 0x38d   :  { %v407_v22 = vsel %vm299_vm5, %v402_v20, 0 }
 0x390   :  { %v451_v21 = vpop.permute.xlu1 %450 }
 0x391   :  { %1478 = vmatmul.mubr.msk.bf16.vlgmr.msra.gmra.mrb[8].mxu1 %vm299_vm5, %v348_v18  ;;  %1490 = vmatmul.mubr.msk.bf16.vlgmr.msra.gmra.mrb[4].mxu0 %vm299_vm5, %v451_v21 }
 0x392   :  { %1482 = vmatpush3.bf16.xpose.msra.mxu1 %v407_v22  ;;  %1483 = vmatprep.mubr.msk.bf16.mxu1 %vm1718_vm0, %v1717_v1 }
 0x393   :  { %1493 = vmatprep.subr.bf16.mxu1 %v1717_v1  ;;  %1501 = vmatprep.mubr.msk.bf16.mxu0 %vm1718_vm0, %v1717_v1 }
 0x399   :  { %1484 = vmatmul.mubr.msk.bf16.vlgmr.msra.gmra.mrb[12].mxu1 %vm299_vm5, %v398_v11 }
 0x39a   :  { %1495 = vmatprep.mubr.msk.bf16.mxu1 %vm1718_vm0, %v1717_v1 }
 0x45c   :  { %v340_v29 = vpop.f32.mrb[4].mxu1 }
 0x45d   :  { %v500_v30 = vadd.f32 %v340_v29, %v222_v28  ;;  %v1473_v31 = vpop.f32.mrb[5].mxu1 }
 0x45e   :  { %v343_v32 = vpop.f32.mrb[6].mxu1 }
 0x45f   :  { %v1474_v33 = vpop.f32.mrb[7].mxu1  ;;  %v505_v34 = vsel %vm504_vm6, %v500_v30, -inf }
 0x460   :  { %506 = vmax.xlane.f32.xlu1 %v505_v34 }
 0x464   :  { %v391_v35 = vpop.f32.mrb[8].mxu1  ;;  %v494_v36 = vpop.f32.mrb[4].mxu0 }
 0x465   :  { %v501_v37 = vadd.f32 %v391_v35, %v222_v28  ;;  %v1479_v38 = vpop.f32.mrb[9].mxu1  ;;  %v1491_v39 = vpop.f32.mrb[5].mxu0  ;;  %v503_v50 = vadd.f32 %v494_v36, %v226_v45 }
 0x466   :  { %v394_v40 = vpop.f32.mrb[10].mxu1  ;;  %v497_v41 = vpop.f32.mrb[6].mxu0  ;;  %v1600_v38 = vld [vmem:[#allocation4 + $0x50] sm:$0xff]  }
 0x467   :  { %v1480_v42 = vpop.f32.mrb[11].mxu1  ;;  %v1492_v43 = vpop.f32.mrb[7].mxu0  ;;  %v508_v44 = vsel %vm504_vm6, %v501_v37, -inf  ;;  %v514_v53 = vsel %vm504_vm6, %v503_v50, -inf }
 0x468   :  { %509 = vmax.xlane.f32.xlu0 %v508_v44  ;;  %v1601_v43 = vld [vmem:[#allocation4 + $0x58] sm:$0xff]  }
 0x46c   :  { %v443_v46 = vpop.f32.mrb[12].mxu1 }
 0x46d   :  { %v502_v47 = vadd.f32 %v443_v46, %v226_v45  ;;  %v1485_v48 = vpop.f32.mrb[13].mxu1 }
 0x46e   :  { %v446_v49 = vpop.f32.mrb[14].mxu1 }
 0x46f   :  { %v1486_v51 = vpop.f32.mrb[15].mxu1  ;;  %v511_v52 = vsel %vm504_vm6, %v502_v47, -inf }
 0x470   :  { %512 = vmax.xlane.f32.xlu1 %v511_v52 }
 0x474   :  { %515 = vmax.xlane.f32.xlu1 %v514_v53 }
 0x4ed   :  { %v507_v54 = vpop.xlane.xlu1 %506 }
 0x4ee   :  { %v517_v55 = vsub.f32 %v500_v30, %v507_v54 }
 0x4f0   :  { %v521_v56 = vmul.f32 1.442695, %v517_v55 }
 0x4f2   :  { %1618 = vpow2.f32 %v521_v56 }
 0x4f5   :  { %v510_v57 = vpop.xlane.xlu0 %509 }
 0x4f6   :  { %v518_v58 = vsub.f32 %v501_v37, %v510_v57 }
 0x4f8   :  { %v523_v61 = vmul.f32 1.442695, %v518_v58 }
 0x4fa   :  { %1620 = vpow2.f32 %v523_v61 }
 0x4fc   :  { %v1619_v62 = vpop.eup %1618 }
 0x4fd   :  { %v513_v63 = vpop.xlane.xlu1 %512  ;;  %v529_v0 = vsel %vm504_vm6, %v1619_v62, 0.0 }
 0x4fe   :  { %v519_v2 = vsub.f32 %v502_v47, %v513_v63  ;;  %530 = vadd.xlane.f32.xlu1 %v529_v0  ;;  %v1361_v0 = vld [vmem:[#allocation2 + $0x3] ss:$0 sm:$0xff] }
 0x500   :  { %v525_v3 = vmul.f32 1.442695, %v519_v2 }
 0x501   :  { %v516_v5 = vpop.xlane.xlu1 %515 }
 0x502   :  { %1622 = vpow2.f32 %v525_v3  ;;  %v520_v6 = vsub.f32 %v503_v50, %v516_v5 }
 0x504   :  { %v1621_v8 = vpop.eup %1620  ;;  %v527_v9 = vmul.f32 1.442695, %v520_v6 }
 0x505   :  { %v532_v10 = vsel %vm504_vm6, %v1621_v8, 0.0 }
 0x506   :  { %1624 = vpow2.f32 %v527_v9  ;;  %533 = vadd.xlane.f32.xlu0 %v532_v10 }
 0x50c   :  { %v1623_v11 = vpop.eup %1622 }
 0x50d   :  { %v535_v13 = vsel %vm504_vm6, %v1623_v11, 0.0 }
 0x50e   :  { %536 = vadd.xlane.f32.xlu1 %v535_v13 }
 0x510   :  { %v1625_v14 = vpop.eup %1624 }
 0x511   :  { %v538_v15 = vsel %vm504_vm6, %v1625_v14, 0.0 }
 0x512   :  { %539 = vadd.xlane.f32.xlu0 %v538_v15 }
 0x51f   :  { %602 = vrot.lane.b32.xlu1 %v1814_v4, %s1723_s1 }
 0x523   :  { %551 = vrot.lane.b32.xlu1 %v1814_v4, %s1714_s2 }
 0x527   :  { %650 = vrot.lane.b32.xlu1 %v1816_v7, %s1714_s2 }
 0x528   :  { %700 = vrot.lane.b32.xlu0 %v1816_v7, %s1723_s1 }
 0x58b   :  { %v531_v16 = vpop.xlane.xlu1 %530 }
 0x58c   :  { %1626 = vrcp.f32 %v531_v16 }
 0x593   :  { %v534_v17 = vpop.xlane.xlu0 %533 }
 0x594   :  { %1628 = vrcp.f32 %v534_v17 }
 0x596   :  { %v1627_v19 = vpop.eup %1626 }
 0x597   :  { %v545_v21 = vmul.f32 %v1627_v19, %v1619_v62  ;;  %v1602_v19 = vld [vmem:[#allocation4 + $0x60] sm:$0xff]  }
 0x59b   :  { %v537_v18 = vpop.xlane.xlu1 %536 }
 0x59c   :  { %1630 = vrcp.f32 %v537_v18 }
 0x59e   :  { %v1629_v20 = vpop.eup %1628 }
 0x59f   :  { %v546_v22 = vmul.f32 %v1629_v20, %v1621_v8  ;;  %v540_v23 = vpop.xlane.xlu0 %539  ;;  %v603_v24 = vpop.permute.xlu1 %602 }
 0x5a0   :  { %1632 = vrcp.f32 %v540_v23  ;;  %v608_v4 = vsel %vm556_vm7, %v603_v24, 0 }
 0x5a1   :  { %v549_v25 = vpack.c.bf16 %v546_v22, %v545_v21  ;;  %1500 = vmatpush3.bf16.msra.mxu0 %v608_v4 }
 0x5a2   :  { %1511 = vmatprep.subr.bf16.mxu0 %v1717_v1 }
 0x5a3   :  { %v701_v7 = vpop.permute.xlu0 %700  ;;  %v552_v26 = vpop.permute.xlu1 %551  ;;  %v601_v27 = vrot.slane %v549_v25, 4 }
 0x5a4   :  { %v706_v28 = vsel %vm556_vm7, %v701_v7, 0  ;;  %v558_v29 = vsel %vm556_vm7, %v552_v26, 0 }
 0x5a5   :  { %1494 = vmatpush3.bf16.msra.mxu1 %v558_v29  ;;  %1502 = vmatmul.mubr.msk.bf16.vlgmr.msra.gmra.mrb[8].mxu0 %vm504_vm6, %v601_v27 }
 0x5a6   :  { %1512 = vmatpush3.bf16.msra.mxu0 %v706_v28  ;;  %1505 = vmatprep.subr.bf16.mxu1 %v1717_v1  ;;  %v1631_v31 = vpop.eup %1630 }
 0x5a7   :  { %v651_v30 = vpop.permute.xlu1 %650  ;;  %1513 = vmatprep.mubr.msk.bf16.mxu0 %vm1718_vm0, %v1717_v1  ;;  %1525 = vmatprep.subr.bf16.mxu0 %v1717_v1  ;;  %v547_v34 = vmul.f32 %v1631_v31, %v1623_v11 }
 0x5a8   :  { %v656_v32 = vsel %vm556_vm7, %v651_v30, 0  ;;  %1496 = vmatmul.mubr.msk.bf16.vlgmr.msra.gmra.mrb[16].mxu1 %vm504_vm6, %v549_v25 }
 0x5a9   :  { %1506 = vmatpush3.bf16.msra.mxu1 %v656_v32  ;;  %1507 = vmatprep.mubr.msk.bf16.mxu1 %vm1718_vm0, %v1717_v1 }
 0x5aa   :  { %v1633_v33 = vpop.eup %1632  ;;  %1517 = vmatprep.subr.bf16.mxu1 %v1717_v1 }
 0x5ab   :  { %v548_v35 = vmul.f32 %v1633_v33, %v1625_v14 }
 0x5ad   :  { %v550_v36 = vpack.c.bf16 %v548_v35, %v547_v34  ;;  %v1365_v35 = vld [vmem:[#allocation2 + $0x4] ss:$0 sm:$0xff] }
 0x5af   :  { %v699_v37 = vrot.slane %v550_v36, 4 }
 0x5b0   :  { %1508 = vmatmul.mubr.msk.bf16.vlgmr.msra.gmra.mrb[20].mxu1 %vm504_vm6, %v550_v36 }
 0x5b1   :  { %1514 = vmatmul.mubr.msk.bf16.vlgmr.msra.gmra.mrb[12].mxu0 %vm504_vm6, %v699_v37  ;;  %1521 = vmatprep.mubr.msk.bf16.mxu1 %vm1718_vm0, %v1717_v1 }
 0x5b2   :  { %1529 = vmatprep.mubr.msk.bf16.mxu0 %vm1718_vm0, %v1717_v1  ;;  %1518 = vmatpush3.bf16.msra.mxu1 %v1600_v38 }
 0x5b3   :  { %1519 = vmatprep.subr.bf16.mxu1 %v1717_v1  ;;  %1526 = vmatpush3.bf16.msra.mxu0 %v1602_v19 }
 0x5b4   :  { %1527 = vmatprep.subr.bf16.mxu0 %v1717_v1 }
 0x5b6   :  { %1520 = vmatpush3.bf16.msra.mxu1 %v1601_v43 }
 0x5b7   :  { %1533 = vmatprep.subr.bf16.mxu1 %v1717_v1 }
 0x678   :  { %v644_v39 = vpop.f32.mrb[8].mxu0 }
 0x679   :  { %v1503_v40 = vpop.f32.mrb[9].mxu0 }
 0x67a   :  { %v647_v41 = vpop.f32.mrb[10].mxu0 }
 0x67b   :  { %v594_v12 = vpop.f32.mrb[16].mxu1  ;;  %v1504_v42 = vpop.f32.mrb[11].mxu0  ;;  %v1366_v41 = vld [vmem:[#allocation2 + $0x5] ss:$0 sm:$0xff] }
 0x67c   :  { %v1497_v44 = vpop.f32.mrb[17].mxu1 }
 0x67d   :  { %v597_v45 = vpop.f32.mrb[18].mxu1 }
 0x67e   :  { %v1498_v46 = vpop.f32.mrb[19].mxu1  ;;  %v1604_v45 = vld [vmem:[#allocation4 + $0x70] sm:$0xff]  }
 0x67f   :  { %v1605_v46 = vld [vmem:[#allocation4 + $0x78] sm:$0xff]  }
 0x683   :  { %v692_v47 = vpop.f32.mrb[20].mxu1 }
 0x684   :  { %v1509_v48 = vpop.f32.mrb[21].mxu1  ;;  %v742_v49 = vpop.f32.mrb[12].mxu0 }
 0x685   :  { %v1585_v50 = vpack.i.bf16 %v742_v49, %v644_v39  ;;  %v695_v51 = vpop.f32.mrb[22].mxu1  ;;  %v1515_v52 = vpop.f32.mrb[13].mxu0  ;;  %v1607_v48 = vld [vmem:[#allocation4 + $0x88] sm:$0xff]   ;;  %v1367_v49 = vld [vmem:[#allocation2 + $0x6] ss:$0 sm:$0xff] }
 0x686   :  { %v1510_v53 = vpop.f32.mrb[23].mxu1  ;;  %v745_v54 = vpop.f32.mrb[14].mxu0 }
 0x687   :  { %1586 = vrot.lane.b32.xlu0 %v1585_v50, %s1724_s23  ;;  %v1516_v55 = vpop.f32.mrb[15].mxu0 }
 0x6f9   :  { %v1587_v56 = vpop.permute.xlu0 %1586 }
 0x6fa   :  { %v1589_v57 = vunpack.i.h.bf16 %v1587_v56  ;;  %v1588_v58 = vunpack.i.l.bf16 %v1587_v56 }
 0x6fc   :  { %v757_v61 = vsel %vm299_vm5, %v692_v47, %v1589_v57  ;;  %v752_v62 = vsel %vm299_vm5, %v594_v12, %v1588_v58  ;;  %v1606_v47 = vld [vmem:[#allocation4 + $0x80] sm:$0xff]  }
 0x6fd   :  { %v762_v63 = vpack.c.bf16 %v757_v61, %v752_v62 }
 0x6ff   :  { %1522 = vmatmul.mubr.msk.bf16.vlgmr.msra.gmra.mrb[24].mxu1 %vm170_vm4, %v762_v63 }
 0x700   :  { %1541 = vmatprep.mubr.msk.bf16.mxu1 %vm1718_vm0, %v1717_v1  ;;  %1534 = vmatpush3.bf16.msra.mxu1 %v1604_v45 }
 0x701   :  { %1535 = vmatprep.subr.bf16.mxu1 %v1717_v1 }
 0x704   :  { %1536 = vmatpush3.bf16.msra.mxu1 %v1605_v46 }
 0x705   :  { %1537 = vmatprep.subr.bf16.mxu1 %v1717_v1 }
 0x708   :  { %1538 = vmatpush3.bf16.msra.mxu1 %v1606_v47 }
 0x709   :  { %1539 = vmatprep.subr.bf16.mxu1 %v1717_v1 }
 0x70c   :  { %1540 = vmatpush3.bf16.msra.mxu1 %v1607_v48 }
 0x70d   :  { %1561 = vmatprep.subr.bf16.mxu1 %v1717_v1 }
 0x7d2   :  { %v817_v2 = vpop.f32.mrb[24].mxu1 }
 0x7d3   :  { %v818_v3 = vadd.f32 %v1361_v0, %v817_v2  ;;  %v1523_v5 = vpop.f32.mrb[25].mxu1 }
 0x7d4   :  { %v820_v6 = vpop.f32.mrb[26].mxu1 }
 0x7d5   :  { %v824_v8 = vadd.f32 %v818_v3, %v1805_v59  ;;  %v821_v9 = vadd.f32 %v1361_v0, %v820_v6  ;;  %v1524_v10 = vpop.f32.mrb[27].mxu1  ;;  %v1603_v59 = vld [vmem:[#allocation4 + $0x68] sm:$0xff]  }
 0x7d6   :  { %1528 = vmatpush3.bf16.msra.mxu0 %v1603_v59 }
 0x7d7   :  { %v825_v11 = vadd.f32 %v821_v9, %v1807_v60  ;;  %v828_v13 = vsel %vm170_vm4, %v824_v8, 0.0  ;;  %v836_v16 = vmul.f32 %v824_v8, %v824_v8  ;;  %1545 = vmatprep.subr.bf16.mxu0 %v1717_v1 }
 0x7d8   :  { %829 = vadd.xlane.f32.xlu1 %v828_v13 }
 0x7d9   :  { %v831_v14 = vsel %vm170_vm4, %v825_v11, 0.0  ;;  %v837_v15 = vmul.f32 %v825_v11, %v825_v11  ;;  %v838_v18 = vsel %vm170_vm4, %v836_v16, 0.0 }
 0x7da   :  { %832 = vadd.xlane.f32.xlu0 %v831_v14 }
 0x7db   :  { %v841_v17 = vsel %vm170_vm4, %v837_v15, 0.0 }
 0x7dc   :  { %842 = vadd.xlane.f32.xlu1 %v841_v17  ;;  %v1371_v17 = vld [vmem:[#allocation2 + $0x7] ss:$0 sm:$0xff] }
 0x7de   :  { %839 = vadd.xlane.f32.xlu0 %v838_v18 }
 0x865   :  { %v830_v60 = vpop.xlane.xlu1 %829 }
 0x866   :  { %v834_v21 = vmul.f32 0.03125, %v830_v60 }
 0x867   :  { %v833_v20 = vpop.xlane.xlu0 %832 }
 0x868   :  { %v835_v22 = vmul.f32 0.03125, %v833_v20  ;;  %v846_v7 = vmul.f32 %v834_v21, %v834_v21  ;;  %v852_v36 = vsub.f32 %v824_v8, %v834_v21 }
 0x869   :  { %v843_v23 = vpop.xlane.xlu1 %842 }
 0x86a   :  { %v847_v24 = vmul.f32 %v835_v22, %v835_v22  ;;  %v845_v4 = vmul.f32 0.03125, %v843_v23  ;;  %v853_v33 = vsub.f32 %v825_v11, %v835_v22 }
 0x86b   :  { %v840_v25 = vpop.xlane.xlu0 %839 }
 0x86c   :  { %v849_v26 = vsub.f32 %v845_v4, %v847_v24  ;;  %v844_v27 = vmul.f32 0.03125, %v840_v25 }
 0x86e   :  { %v851_v28 = vmax.f32 %v849_v26, 0.0  ;;  %v848_v29 = vsub.f32 %v844_v27, %v846_v7 }
 0x870   :  { %v855_v30 = vadd.f32 1e-12, %v851_v28  ;;  %v850_v31 = vmax.f32 %v848_v29, 0.0  ;;  %v1608_v28 = vld [vmem:[#allocation4 + $0x90] sm:$0xff]   ;;  %v1609_v29 = vld [vmem:[#allocation4 + $0x98] sm:$0xff]  }
 0x872   :  { %1634 = vrsqrt.f32 %v855_v30  ;;  %v854_v32 = vadd.f32 1e-12, %v850_v31 }
 0x874   :  { %1636 = vrsqrt.f32 %v854_v32 }
 0x87c   :  { %v1635_v34 = vpop.eup %1634 }
 0x87d   :  { %v859_v37 = vmul.f32 %v1635_v34, %v853_v33 }
 0x87e   :  { %v1637_v38 = vpop.eup %1636 }
 0x87f   :  { %v858_v39 = vmul.f32 %v1637_v38, %v852_v36  ;;  %v865_v40 = vmul.f32 %v1365_v35, %v859_v37 }
 0x881   :  { %v864_v12 = vmul.f32 %v1365_v35, %v858_v39  ;;  %v871_v43 = vadd.f32 %v1366_v41, %v865_v40 }
 0x883   :  { %v870_v42 = vadd.f32 %v1366_v41, %v864_v12 }
 0x885   :  { %v876_v44 = vpack.c.bf16 %v871_v43, %v870_v42 }
 0x887   :  { %1530 = vmatmul.mubr.msk.bf16.vlgmr.msra.gmra.mrb[16].mxu0 %vm170_vm4, %v876_v44 }
 0x888   :  { %1549 = vmatprep.mubr.msk.bf16.mxu0 %vm1718_vm0, %v1717_v1  ;;  %1546 = vmatpush3.bf16.msra.mxu0 %v1608_v28 }
 0x889   :  { %1547 = vmatprep.subr.bf16.mxu0 %v1717_v1 }
 0x88c   :  { %1548 = vmatpush3.bf16.msra.mxu0 %v1609_v29 }
 0x88d   :  { %1553 = vmatprep.subr.bf16.mxu0 %v1717_v1 }
 0x95a   :  { %v931_v50 = vpop.f32.mrb[16].mxu0 }
 0x95b   :  { %v932_v51 = vadd.f32 %v1367_v49, %v931_v50  ;;  %v1531_v52 = vpop.f32.mrb[17].mxu0  ;;  %v1377_v50 = vld [vmem:[#allocation2 + $0x8] ss:$0 sm:$0xff] }
 0x95c   :  { %v934_v53 = vpop.f32.mrb[18].mxu0 }
 0x95d   :  { %v938_v54 = vmul.f32 %v932_v51, %v932_v51  ;;  %v935_v55 = vadd.f32 %v1367_v49, %v934_v53  ;;  %v1532_v56 = vpop.f32.mrb[19].mxu0 }
 0x95f   :  { %v940_v57 = vmul.f32 %v938_v54, %v932_v51  ;;  %v939_v58 = vmul.f32 %v935_v55, %v935_v55  ;;  %v1378_v54 = vld [vmem:[#allocation2 + $0x9] ss:$0 sm:$0xff] }
 0x961   :  { %v942_v61 = vmul.f32 0.044715, %v940_v57  ;;  %v941_v62 = vmul.f32 %v939_v58, %v935_v55 }
 0x963   :  { %v944_v63 = vadd.f32 %v942_v61, %v932_v51  ;;  %v943_v0 = vmul.f32 0.044715, %v941_v62  ;;  %v1379_v62 = vld [vmem:[#allocation2 + $0xa] ss:$0 sm:$0xff] }
 0x965   :  { %v946_v2 = vmul.f32 0.7978846, %v944_v63  ;;  %v945_v3 = vadd.f32 %v943_v0, %v935_v55 }
 0x967   :  { %1638 = vtanh.f32 %v946_v2  ;;  %v947_v5 = vmul.f32 0.7978846, %v945_v3 }
 0x969   :  { %1640 = vtanh.f32 %v947_v5 }
 0x971   :  { %v1639_v6 = vpop.eup %1638 }
 0x972   :  { %v950_v8 = vadd.f32 1.0, %v1639_v6 }
 0x973   :  { %v1641_v9 = vpop.eup %1640 }
 0x974   :  { %v952_v10 = vmul.f32 0.5, %v950_v8  ;;  %v951_v11 = vadd.f32 1.0, %v1641_v9 }
 0x976   :  { %v953_v13 = vmul.f32 0.5, %v951_v11  ;;  %v954_v14 = vmul.f32 %v952_v10, %v932_v51 }
 0x978   :  { %v955_v15 = vmul.f32 %v953_v13, %v935_v55 }
 0x97a   :  { %v964_v16 = vpack.c.bf16 %v955_v15, %v954_v14  ;;  %v1610_v15 = vld [vmem:[#allocation4 + $0xa0] sm:$0xff]  }
 0x97c   :  { %1542 = vmatmul.mubr.msk.bf16.vlgmr.msra.gmra.mrb[28].mxu1 %vm994_vm8, %v964_v16  ;;  %v1611_v16 = vld [vmem:[#allocation4 + $0xa8] sm:$0xff]  }
 0x97d   :  { %1565 = vmatprep.mubr.msk.bf16.mxu1 %vm1718_vm0, %v1717_v1 }
 0xa4f   :  { %v1032_v18 = vpop.f32.mrb[28].mxu1 }
 0xa50   :  { %v1033_v19 = vadd.f32 %v1371_v17, %v1032_v18  ;;  %v1543_v59 = vpop.f32.mrb[29].mxu1 }
 0xa51   :  { %v1035_v60 = vpop.f32.mrb[30].mxu1 }
 0xa52   :  { %v1039_v20 = vadd.f32 %v1033_v19, %v870_v42  ;;  %v1036_v21 = vadd.f32 %v1371_v17, %v1035_v60  ;;  %v1544_v22 = vpop.f32.mrb[31].mxu1 }
 0xa54   :  { %v1040_v23 = vadd.f32 %v1036_v21, %v871_v43  ;;  %v1043_v24 = vsel %vm170_vm4, %v1039_v20, 0.0  ;;  %v1051_v4 = vmul.f32 %v1039_v20, %v1039_v20 }
 0xa55   :  { %1044 = vadd.xlane.f32.xlu1 %v1043_v24 }
 0xa56   :  { %v1046_v25 = vsel %vm170_vm4, %v1040_v23, 0.0  ;;  %v1052_v7 = vmul.f32 %v1040_v23, %v1040_v23  ;;  %v1053_v26 = vsel %vm170_vm4, %v1051_v4, 0.0 }
 0xa57   :  { %1047 = vadd.xlane.f32.xlu0 %v1046_v25 }
 0xa58   :  { %v1056_v27 = vsel %vm170_vm4, %v1052_v7, 0.0 }
 0xa59   :  { %1054 = vadd.xlane.f32.xlu1 %v1053_v26 }
 0xa5b   :  { %1057 = vadd.xlane.f32.xlu0 %v1056_v27 }
 0xae2   :  { %v1045_v30 = vpop.xlane.xlu1 %1044 }
 0xae3   :  { %v1049_v31 = vmul.f32 0.03125, %v1045_v30 }
 0xae4   :  { %v1048_v32 = vpop.xlane.xlu0 %1047 }
 0xae5   :  { %v1050_v33 = vmul.f32 0.03125, %v1048_v32  ;;  %v1061_v35 = vmul.f32 %v1049_v31, %v1049_v31  ;;  %v1067_v45 = vsub.f32 %v1039_v20, %v1049_v31  ;;  %v1384_v20 = vld [vmem:[#allocation2 + $0xb] ss:$0 sm:$0xff]  ;;  %v1612_v31 = vld [vmem:[#allocation4 + $0xb0] sm:$0xff]   ;;  %v1613_v32 = vld [vmem:[#allocation4 + $0xb8] sm:$0xff]  }
 0xae6   :  { %v1055_v34 = vpop.xlane.xlu1 %1054  ;;  %1562 = vmatpush3.bf16.msra.mxu1 %v1612_v31 }
 0xae7   :  { %v1059_v36 = vmul.f32 0.03125, %v1055_v34  ;;  %v1062_v38 = vmul.f32 %v1050_v33, %v1050_v33  ;;  %v1068_v47 = vsub.f32 %v1040_v23, %v1050_v33  ;;  %1563 = vmatprep.subr.bf16.mxu1 %v1717_v1 }
 0xae8   :  { %v1058_v37 = vpop.xlane.xlu0 %1057 }
 0xae9   :  { %v1063_v39 = vsub.f32 %v1059_v36, %v1061_v35  ;;  %v1060_v40 = vmul.f32 0.03125, %v1058_v37 }
 0xaea   :  { %1564 = vmatpush3.bf16.msra.mxu1 %v1613_v32 }
 0xaeb   :  { %v1065_v41 = vmax.f32 %v1063_v39, 0.0  ;;  %v1064_v12 = vsub.f32 %v1060_v40, %v1062_v38  ;;  %v1389_v38 = vld [vmem:[#allocation2 + $0xc] ss:$0 sm:$0xff] }
 0xaed   :  { %v1069_v42 = vadd.f32 1e-12, %v1065_v41  ;;  %v1066_v43 = vmax.f32 %v1064_v12, 0.0 }
 0xaef   :  { %1642 = vrsqrt.f32 %v1069_v42  ;;  %v1070_v44 = vadd.f32 1e-12, %v1066_v43 }
 0xaf1   :  { %1644 = vrsqrt.f32 %v1070_v44 }
 0xaf9   :  { %v1643_v46 = vpop.eup %1642 }
 0xafa   :  { %v1073_v48 = vmul.f32 %v1643_v46, %v1067_v45 }
 0xafb   :  { %v1645_v49 = vpop.eup %1644 }
 0xafc   :  { %v1074_v51 = vmul.f32 %v1645_v49, %v1068_v47  ;;  %v1079_v52 = vmul.f32 %v1377_v50, %v1073_v48 }
 0xafe   :  { %v1080_v53 = vmul.f32 %v1377_v50, %v1074_v51  ;;  %v1085_v56 = vadd.f32 %v1378_v54, %v1079_v52 }
 0xb00   :  { %v1086_v55 = vadd.f32 %v1378_v54, %v1080_v53 }
 0xb02   :  { %v1088_v57 = vrot.slane %v1086_v55, 7 }
 0xb04   :  { %v1091_v58 = vsel %vm1090_vm9, %v1085_v56, %v1088_v57 }
 0xb05   :  { %v1096_v61 = vpack.c.bf16 %v1091_v58, %v1091_v58 }
 0xb07   :  { %1550 = vmatmul.mubr.msk.bf16.vlgmr.msra.gmra.mrb[20].mxu0 %vm170_vm4, %v1096_v61 }
 0xb08   :  { %1557 = vmatprep.mubr.msk.bf16.mxu0 %vm1718_vm0, %v1717_v1  ;;  %1554 = vmatpush3.bf16.msra.mxu0 %v1610_v15 }
 0xb09   :  { %1555 = vmatprep.subr.bf16.mxu0 %v1717_v1 }
 0xb0c   :  { %1556 = vmatpush3.bf16.msra.mxu0 %v1611_v16 }
 0xbda   :  { %v1151_v63 = vpop.f32.mrb[20].mxu0 }
 0xbdb   :  { %v1152_v0 = vadd.f32 %v1379_v62, %v1151_v63  ;;  %v1551_v2 = vpop.f32.mrb[21].mxu0 }
 0xbdc   :  { %v1154_v3 = vpop.f32.mrb[22].mxu0 }
 0xbdd   :  { %1646 = vtanh.f32 %v1152_v0  ;;  %v1552_v5 = vpop.f32.mrb[23].mxu0  ;;  %v1383_v8 = vmul.f32 -1.442695, %v1152_v0 }
 0xbdf   :  { %1648 = vpow2.f32 %v1383_v8 }
 0xbe7   :  { %v1647_v6 = vpop.eup %1646 }
 0xbe8   :  { %1165 = vrot.lane.b32.xlu0 %v1647_v6, %s1720_s0 }
 0xbe9   :  { %v1649_v9 = vpop.eup %1648 }
 0xbea   :  { %v1160_v10 = vadd.f32 1.0, %v1649_v9 }
 0xbec   :  { %1650 = vrcp.f32 %v1160_v10 }
 0xbf6   :  { %v1651_v11 = vpop.eup %1650 }
 0xc5a   :  { %v1166_v13 = vpop.permute.xlu0 %1165 }
 0xc5b   :  { %v1168_v14 = vmul.f32 %v1651_v11, %v1166_v13 }
 0xc5d   :  { %1652 = vtanh.f32 %v1168_v14 }
 0xc67   :  { %v1653_v17 = vpop.eup %1652 }
 0xc68   :  { %1171 = vrot.lane.b32.xlu1 %v1653_v17, %s1714_s2 }
 0xcda   :  { %v1172_v18 = vpop.permute.xlu1 %1171 }
 0xcdb   :  { %v1174_v19 = vmul.f32 %v1651_v11, %v1172_v18 }
 0xcdd   :  { %v1179_v59 = vpack.c.bf16 %v1174_v19, %v1174_v19 }
 0xcdf   :  { %1186 = vrot.lane.b32.xlu1 %v1179_v59, %s1714_s2 }
 0xd51   :  { %v1187_v60 = vpop.permute.xlu1 %1186 }
 0xd52   :  { %1558 = vmatmul.mubr.msk.bf16.vlgmr.msra.gmra.mrb[24].mxu0 %vm170_vm4, %v1187_v60 }
 0xe25   :  { %v1237_v21 = vpop.f32.mrb[24].mxu0 }
 0xe26   :  { %v1238_v22 = vadd.f32 %v1384_v20, %v1237_v21  ;;  %v1559_v23 = vpop.f32.mrb[25].mxu0 }
 0xe27   :  { %v1240_v24 = vpop.f32.mrb[26].mxu0 }
 0xe28   :  { %1654 = vtanh.f32 %v1238_v22  ;;  %v1560_v4 = vpop.f32.mrb[27].mxu0  ;;  %v1388_v7 = vmul.f32 -1.442695, %v1238_v22 }
 0xe2a   :  { %1656 = vpow2.f32 %v1388_v7 }
 0xe32   :  { %v1655_v25 = vpop.eup %1654 }
 0xe33   :  { %1251 = vrot.lane.b32.xlu0 %v1655_v25, %s1720_s0 }
 0xe34   :  { %v1657_v26 = vpop.eup %1656 }
 0xe35   :  { %v1246_v27 = vadd.f32 1.0, %v1657_v26 }
 0xe37   :  { %1658 = vrcp.f32 %v1246_v27 }
 0xe41   :  { %v1659_v28 = vpop.eup %1658 }
 0xea5   :  { %v1252_v29 = vpop.permute.xlu0 %1251 }
 0xea6   :  { %v1254_v30 = vmul.f32 %v1659_v28, %v1252_v29 }
 0xea8   :  { %1660 = vtanh.f32 %v1254_v30 }
 0xeb2   :  { %v1661_v33 = vpop.eup %1660 }
 0xeb3   :  { %1257 = vrot.lane.b32.xlu1 %v1661_v33, %s1714_s2 }
 0xf25   :  { %v1258_v34 = vpop.permute.xlu1 %1257 }
 0xf26   :  { %v1260_v35 = vmul.f32 %v1659_v28, %v1258_v34 }
 0xf28   :  { %v1265_v36 = vpack.c.bf16 %v1260_v35, %v1260_v35 }
 0xf2a   :  { %1272 = vrot.lane.b32.xlu0 %v1265_v36, %s1714_s2 }
 0xf9c   :  { %v1273_v37 = vpop.permute.xlu0 %1272 }
 0xf9d   :  { %1566 = vmatmul.mubr.msk.bf16.vlgmr.msra.gmra.mrb[32].mxu1 %vm170_vm4, %v1273_v37 }
0x1070   :  { %v1323_v39 = vpop.f32.mrb[32].mxu1 }
0x1071   :  { %v1324_v40 = vadd.f32 %v1389_v38, %v1323_v39  ;;  %v1567_v41 = vpop.f32.mrb[33].mxu1 }
0x1072   :  { %v1326_v12 = vpop.f32.mrb[34].mxu1 }
0x1073   :  { %1330 = vst.msk [vmem:[%s1932_s4] sm:$0x3] %vm1329_vm10, %v1324_v40  ;;  %v1568_v1 = vpop.f32.mrb[35].mxu1 }
0x1074   :  { %1335 = vsyncpa [#allocation3], 1 }
0x1075   :  { %1336 = vsyncpa [#allocation5], 1 }

</bundles_post_ra>
